<compile_context>
chip_gen: v7x
topology: tpu7x:2x2x1
jax: 0.10.0
libtpu: 0.0.40
codegen_flags: <defaults>
</compile_context>

<pallas_src>
import functools

import jax
import jax.numpy as jnp
from jax import lax
from jax.experimental import pallas as pl
from jax.experimental.pallas import tpu as pltpu


_INV_SQRT2 = 0.7071067811865476
_LN_EPS = 1e-5                      # nn.LayerNorm default


# --------------------------------------------------------------- shared math helpers
# These operate on plain (S, D) arrays and are used both inside the Pallas kernels
# and (via vmap) by the pure-JAX reference, so both paths run the exact same formula.

def _gelu_exact(x):
    # PyTorch nn.GELU() default: 0.5 * x * (1 + erf(x / sqrt(2)))
    return 0.5 * x * (1.0 + lax.erf(x * _INV_SQRT2))


def _layernorm(x, gamma, beta):
    x = x.astype(jnp.float32)
    mean = jnp.mean(x, axis=-1, keepdims=True)
    var = jnp.mean(jnp.square(x - mean), axis=-1, keepdims=True)
    return (x - mean) * lax.rsqrt(var + _LN_EPS) * gamma + beta


def _mm(a, b, dot_dtype):
    # MXU matmul: operands in dot_dtype (bf16 by default), f32 accumulation.
    return jnp.dot(a.astype(dot_dtype), b.astype(dot_dtype),
                   preferred_element_type=jnp.float32)


def _attn_heads_proj(q, k, v, wp, n_heads, head_dim, dot_dtype):
    """Proj(MHSA core): sum_h softmax((q_h*scale) @ k_h^T) @ v_h @ Wp[h-block].

    * scores use lax.dot_general contracting the LAST axis of both operands
      (A @ B^T without emitting a transpose),
    * 1/sqrt(head_dim) is folded into q once (not per-head on the SxS tile),
    * each head's (S, head_dim) context is multiplied straight into the matching
      row-block of Wp and accumulated into a full-lane (S, D) f32 output, so no
      lane concat of narrow head slices is ever materialized.
    """
    S = q.shape[0]
    scale = float(head_dim) ** -0.5
    q = (q * scale).astype(dot_dtype)
    k = k.astype(dot_dtype)
    v = v.astype(dot_dtype)
    wp = wp.astype(dot_dtype)
    nt = (((1,), (1,)), ((), ()))            # contract last dims: q @ k^T, no .T op
    acc = jnp.zeros((S, wp.shape[1]), jnp.float32)
    for h in range(n_heads):
        lo, hi = h * head_dim, (h + 1) * head_dim
        s = lax.dot_general(q[:, lo:hi], k[:, lo:hi], dimension_numbers=nt,
                            preferred_element_type=jnp.float32)
        s = s - jnp.max(s, axis=-1, keepdims=True)
        e = jnp.exp(s)
        p = e / jnp.sum(e, axis=-1, keepdims=True)
        ctx = jnp.dot(p.astype(dot_dtype), v[:, lo:hi],
                      preferred_element_type=jnp.float32)
        acc = acc + jnp.dot(ctx.astype(dot_dtype), wp[lo:hi, :],
                            preferred_element_type=jnp.float32)
    return acc


def _self_attn_block(x, g, b, wqkv, bqkv, wp, bp, n_heads, dot_dtype):
    # x + Proj(MHSA(LN(x)))
    D = x.shape[-1]
    hd = D // n_heads
    xn = _layernorm(x, g, b)
    qkv = _mm(xn, wqkv, dot_dtype) + bqkv
    y = _attn_heads_proj(qkv[:, :D], qkv[:, D:2 * D], qkv[:, 2 * D:],
                         wp, n_heads, hd, dot_dtype) + bp
    return x + y


def _cross_attn_block(x1, x2, residual, g, b, wq, bq, wkv, bkv, wp, bp,
                      n_heads, dot_dtype):
    # residual + Proj(MHCA(LN(x1), LN(x2)))  -- PreNormCross: same LN on both inputs
    D = x1.shape[-1]
    hd = D // n_heads
    x1n = _layernorm(x1, g, b)
    x2n = _layernorm(x2, g, b)
    q = _mm(x1n, wq, dot_dtype) + bq
    kv = _mm(x2n, wkv, dot_dtype) + bkv
    y = _attn_heads_proj(q, kv[:, :D], kv[:, D:], wp, n_heads, hd, dot_dtype) + bp
    return residual + y


def _ffn_block(x_in, residual, g, b, w1, b1, w2, b2, dot_dtype):
    # residual + W2 @ GELU(W1 @ LN(x_in) + b1) + b2
    xn = _layernorm(x_in, g, b)
    h = _gelu_exact(_mm(xn, w1, dot_dtype) + b1)
    return residual + _mm(h, w2, dot_dtype) + b2


# ---------------------------------------------------------------------- kernel bodies

def _make_transformer_layer_kernel(n_heads, dot_dtype):
    def kernel(x_ref, g1, b1, wqkv, bqkv, wp, bp,
               g2, b2, w1, fb1, w2, fb2, o_ref):
        x = x_ref[...].astype(jnp.float32)                       # (S, D)
        xa = _self_attn_block(x, g1[...], b1[...], wqkv[...], bqkv[...],
                              wp[...], bp[...], n_heads, dot_dtype)
        out = _ffn_block(xa, xa, g2[...], b2[...], w1[...], fb1[...],
                         w2[...], fb2[...], dot_dtype)
        o_ref[...] = out.astype(o_ref.dtype)
    return kernel


def _make_cross_layer_kernel(n_heads, dot_dtype, update_x1):
    def kernel(x1_ref, x2_ref, g1, b1, wq, bq, wkv, bkv, wp, bp,
               g2, b2, w1, fb1, w2, fb2, o_ref):
        x1 = x1_ref[...].astype(jnp.float32)                     # (S1, D) queries
        x2 = x2_ref[...].astype(jnp.float32)                     # (S2, D) keys/values
        residual = x1 if update_x1 else x2                       # no extra residual DMA
        xa = _cross_attn_block(x1, x2, residual, g1[...], b1[...], wq[...], bq[...],
                               wkv[...], bkv[...], wp[...], bp[...],
                               n_heads, dot_dtype)
        # mode 'x1': x1 = attn + x1 ; x1 = ff(x1) + x1   (FFN input = updated value)
        # mode 'x2': x2 = attn + x2 ; x2 = ff(x1) + x2   (FFN input = ORIGINAL x1)
        ffn_in = xa if update_x1 else x1
        out = _ffn_block(ffn_in, xa, g2[...], b2[...], w1[...], fb1[...],
                         w2[...], fb2[...], dot_dtype)
        o_ref[...] = out.astype(o_ref.dtype)
    return kernel


# ----------------------------------------------------------------------- call wrappers

def _vmem_cap_bytes():
    try:
        cap = pltpu.get_tpu_info().vmem_capacity_bytes
    except Exception:            # conservative fallback if the query is unavailable
        cap = 64 << 20           # assume the smallest (v7x-sized) VMEM
    # Leave headroom for compiler scratch; never request above ~3/4 of physical.
    return min((cap * 3) // 4, 100 << 20)


def _vmem_limit_bytes(working_set_bytes):
    if working_set_bytes <= (12 << 20):
        return None              # default scoped-VMEM limit is already enough
    return int(min(working_set_bytes + (4 << 20), _vmem_cap_bytes()))


def _const_spec(shape):
    # Resident block: same tile every grid step -> DMA'd once, reused thereafter.
    # TODO(synk): single-buffer resident weights via pipeline_mode=pl.Buffered(1)
    # once verified across target generations (currently left double-buffered).
    return pl.BlockSpec(shape, lambda b: (0,) * len(shape))


def transformer_layer(x, pa, pf, *, n_heads, dot_dtype=jnp.bfloat16):
    """One fused Transformer layer: x += Proj(MHSA(LN1(x))); x += FFN(LN2(x))."""
    B, S, D = x.shape
    Hd = pf["w1"].shape[1]
    w_item = jnp.dtype(dot_dtype).itemsize
    a_item = x.dtype.itemsize

    w_bytes = (4 * D * D + 2 * D * Hd) * w_item
    working_set = (2 * 2 * S * D * a_item                      # x in/out, double-buffered
                   + 2 * w_bytes                                # weights (2 buffers)
                   + (9 * S * D + n_heads * S * S + S * Hd) * 4)  # f32 intermediates
    cost = pl.CostEstimate(
        flops=B * (8 * S * D * D + 4 * S * S * D + 4 * S * D * Hd),
        transcendentals=B * (n_heads * S * S + S * Hd),
        bytes_accessed=2 * B * S * D * a_item + w_bytes,
    )

    return pl.pallas_call(
        _make_transformer_layer_kernel(n_heads, dot_dtype),
        out_shape=jax.ShapeDtypeStruct((B, S, D), x.dtype),
        grid_spec=pltpu.PrefetchScalarGridSpec(
            num_scalar_prefetch=0,
            grid=(B,),
            in_specs=[
                pl.BlockSpec((None, S, D), lambda b: (b, 0, 0)),   # x (per batch)
                _const_spec((1, D)), _const_spec((1, D)),          # LN1 gamma/beta
                _const_spec((D, 3 * D)), _const_spec((1, 3 * D)),  # Wqkv / bqkv
                _const_spec((D, D)), _const_spec((1, D)),          # Wproj / bproj
                _const_spec((1, D)), _const_spec((1, D)),          # LN2 gamma/beta
                _const_spec((D, Hd)), _const_spec((1, Hd)),        # W1 / b1
                _const_spec((Hd, D)), _const_spec((1, D)),         # W2 / b2
            ],
            out_specs=pl.BlockSpec((None, S, D), lambda b: (b, 0, 0)),
        ),
        compiler_params=pltpu.CompilerParams(
            dimension_semantics=("parallel",),
            vmem_limit_bytes=_vmem_limit_bytes(working_set),
        ),
        cost_estimate=cost,
    )(
        x,
        pa["gamma"].reshape(1, D), pa["beta"].reshape(1, D),
        pa["wqkv"].astype(dot_dtype), pa["bqkv"].reshape(1, 3 * D),
        pa["wproj"].astype(dot_dtype), pa["bproj"].reshape(1, D),
        pf["gamma"].reshape(1, D), pf["beta"].reshape(1, D),
        pf["w1"].astype(dot_dtype), pf["b1"].reshape(1, Hd),
        pf["w2"].astype(dot_dtype), pf["b2"].reshape(1, D),
    )


def cross_layer(x1, x2, pa, pf, *, n_heads, update_x1, dot_dtype=jnp.bfloat16):
    """One fused CrossTransformer layer (cross-attention + FFN), gridded over batch."""
    B, S1, D = x1.shape
    _, S2, _ = x2.shape
    Hd = pf["w1"].shape[1]
    So = S1 if update_x1 else S2
    w_item = jnp.dtype(dot_dtype).itemsize
    a_item = x1.dtype.itemsize

    w_bytes = (4 * D * D + 2 * D * Hd) * w_item
    working_set = (2 * (S1 + S2 + So) * D * a_item
                   + 2 * w_bytes
                   + (6 * (S1 + S2) * D + n_heads * S1 * S2 + S1 * Hd) * 4)
    cost = pl.CostEstimate(
        flops=B * (4 * S1 * D * D + 4 * S2 * D * D + 4 * S1 * S2 * D + 4 * S1 * D * Hd),
        transcendentals=B * (n_heads * S1 * S2 + S1 * Hd),
        bytes_accessed=B * (S1 + S2 + So) * D * a_item + w_bytes,
    )

    return pl.pallas_call(
        _make_cross_layer_kernel(n_heads, dot_dtype, update_x1),
        out_shape=jax.ShapeDtypeStruct((B, So, D), x1.dtype),
        grid_spec=pltpu.PrefetchScalarGridSpec(
            num_scalar_prefetch=0,
            grid=(B,),
            in_specs=[
                pl.BlockSpec((None, S1, D), lambda b: (b, 0, 0)),  # x1 (queries; residual in x1-mode)
                pl.BlockSpec((None, S2, D), lambda b: (b, 0, 0)),  # x2 (kv; residual in x2-mode)
                _const_spec((1, D)), _const_spec((1, D)),          # cross LN gamma/beta
                _const_spec((D, D)), _const_spec((1, D)),          # Wq / bq   (qkv1)
                _const_spec((D, 2 * D)), _const_spec((1, 2 * D)),  # Wkv / bkv (qkv2)
                _const_spec((D, D)), _const_spec((1, D)),          # Wproj / bproj
                _const_spec((1, D)), _const_spec((1, D)),          # FFN LN gamma/beta
                _const_spec((D, Hd)), _const_spec((1, Hd)),        # W1 / b1
                _const_spec((Hd, D)), _const_spec((1, D)),         # W2 / b2
            ],
            out_specs=pl.BlockSpec((None, So, D), lambda b: (b, 0, 0)),
        ),
        compiler_params=pltpu.CompilerParams(
            dimension_semantics=("parallel",),
            vmem_limit_bytes=_vmem_limit_bytes(working_set),
        ),
        cost_estimate=cost,
    )(
        x1, x2,
        pa["gamma"].reshape(1, D), pa["beta"].reshape(1, D),
        pa["wq"].astype(dot_dtype), pa["bq"].reshape(1, D),
        pa["wkv"].astype(dot_dtype), pa["bkv"].reshape(1, 2 * D),
        pa["wproj"].astype(dot_dtype), pa["bproj"].reshape(1, D),
        pf["gamma"].reshape(1, D), pf["beta"].reshape(1, D),
        pf["w1"].astype(dot_dtype), pf["b1"].reshape(1, Hd),
        pf["w2"].astype(dot_dtype), pf["b2"].reshape(1, D),
    )


# ------------------------------------------------------------------ pure-JAX reference
# Same math / same dtype policy via vmap over batch, so it verifies the kernels exactly.

def _ref_transformer_layer(x, pa, pf, *, n_heads, dot_dtype=jnp.bfloat16):
    def one(xb):
        xb = xb.astype(jnp.float32)
        xa = _self_attn_block(xb, pa["gamma"], pa["beta"], pa["wqkv"], pa["bqkv"],
                              pa["wproj"], pa["bproj"], n_heads, dot_dtype)
        return _ffn_block(xa, xa, pf["gamma"], pf["beta"], pf["w1"], pf["b1"],
                          pf["w2"], pf["b2"], dot_dtype)
    return jax.vmap(one)(x)


def _ref_cross_layer(x1, x2, pa, pf, *, n_heads, update_x1, dot_dtype=jnp.bfloat16):
    def one(x1b, x2b):
        x1b = x1b.astype(jnp.float32)
        x2b = x2b.astype(jnp.float32)
        residual = x1b if update_x1 else x2b
        xa = _cross_attn_block(x1b, x2b, residual, pa["gamma"], pa["beta"],
                               pa["wq"], pa["bq"], pa["wkv"], pa["bkv"],
                               pa["wproj"], pa["bproj"], n_heads, dot_dtype)
        ffn_in = xa if update_x1 else x1b
        return _ffn_block(ffn_in, xa, pf["gamma"], pf["beta"], pf["w1"], pf["b1"],
                          pf["w2"], pf["b2"], dot_dtype)
    return jax.vmap(one)(x1, x2)


# --------------------------------------------------------------- model orchestration

def multiscale_apply(params, x1, x2, *, n_heads, mode, use_pallas=True,
                     dot_dtype=jnp.bfloat16):
    """Mirrors MultiScaleTransformer.forward (dropout=0.0 -> identity)."""
    if use_pallas:
        t_layer = functools.partial(transformer_layer, n_heads=n_heads, dot_dtype=dot_dtype)
        c_layer = functools.partial(cross_layer, n_heads=n_heads, dot_dtype=dot_dtype)
    else:
        t_layer = functools.partial(_ref_transformer_layer, n_heads=n_heads, dot_dtype=dot_dtype)
        c_layer = functools.partial(_ref_cross_layer, n_heads=n_heads, dot_dtype=dot_dtype)

    def run_transformer(x, layers):
        for lyr in layers:
            x = t_layer(x, lyr["attn"], lyr["ffn"])              # fused attn+FFN layer
        return x

    def run_cross(xa, xb, layers):
        x = xa
        for d, lyr in enumerate(layers):
            take_x1 = (mode == "x1") or (mode not in ("x1", "x2") and d % 2 == 0)
            if take_x1:
                xa = c_layer(xa, xb, lyr["attn"], lyr["ffn"], update_x1=True)
                x = xa
            else:
                xb = c_layer(xa, xb, lyr["attn"], lyr["ffn"], update_x1=False)
                x = xb
        return x

    # Per the reference forward, transformer_x1 is applied to BOTH inputs
    # (transformer_x2 is constructed in __init__ but never used in forward).
    x1 = run_transformer(x1, params["t1"])
    x2 = run_transformer(x2, params["t1"])
    x3 = run_cross(x1, x2, params["cross"])
    x4 = run_cross(x2, x1, params["cross"])
    return x3 + x4


# --------------------------------------------------------------------- param init

def _init_linear(key, fan_in, fan_out):
    kw, kb = jax.random.split(key)
    w = jax.random.normal(kw, (fan_in, fan_out), jnp.float32) * 0.02
    b = jax.random.normal(kb, (fan_out,), jnp.float32) * 0.02
    return w, b


def _init_ln(key, dim):
    kg, kb = jax.random.split(key)
    gamma = 1.0 + 0.1 * jax.random.normal(kg, (dim,), jnp.float32)
    beta = 0.1 * jax.random.normal(kb, (dim,), jnp.float32)
    return gamma, beta


def init_params(key, dim, depth_1, cross_depth, mlp_dim, mlp_dim_cross):
    params = {"t1": [], "cross": []}
    for _ in range(depth_1):
        key, k1, k2, k3, k4, k5, k6 = jax.random.split(key, 7)
        ln_g, ln_b = _init_ln(k1, dim)
        wqkv, bqkv = _init_linear(k2, dim, 3 * dim)
        wp, bp = _init_linear(k3, dim, dim)
        ln2_g, ln2_b = _init_ln(k4, dim)
        w1, b1 = _init_linear(k5, dim, mlp_dim)
        w2, b2 = _init_linear(k6, mlp_dim, dim)
        params["t1"].append({
            "attn": dict(gamma=ln_g, beta=ln_b, wqkv=wqkv, bqkv=bqkv, wproj=wp, bproj=bp),
            "ffn": dict(gamma=ln2_g, beta=ln2_b, w1=w1, b1=b1, w2=w2, b2=b2),
        })
    for _ in range(cross_depth):
        key, k1, k2, k3, k4, k5, k6, k7 = jax.random.split(key, 8)
        ln_g, ln_b = _init_ln(k1, dim)
        wq, bq = _init_linear(k2, dim, dim)
        wkv, bkv = _init_linear(k3, dim, 2 * dim)
        wp, bp = _init_linear(k4, dim, dim)
        ln2_g, ln2_b = _init_ln(k5, dim)
        w1, b1 = _init_linear(k6, dim, mlp_dim_cross)
        w2, b2 = _init_linear(k7, mlp_dim_cross, dim)
        params["cross"].append({
            "attn": dict(gamma=ln_g, beta=ln_b, wq=wq, bq=bq, wkv=wkv, bkv=bkv,
                         wproj=wp, bproj=bp),
            "ffn": dict(gamma=ln2_g, beta=ln2_b, w1=w1, b1=b1, w2=w2, b2=b2),
        })
    return params


# -------------------------------------------------------------------------- main

if __name__ == "__main__":
    # Small but lane-dense shapes (dim, hidden multiples of 128).
    batch, seq, dim = 2, 8, 128
    n_heads = 4                  # head_dim = 32
    mlp_dim = 256
    mlp_dim_cross = 256
    depth_1, depth_2, cross_depth = 1, 1, 1   # depth_2 unused by the reference forward

    key = jax.random.PRNGKey(0)
    k_x1, k_x2, k_p = jax.random.split(key, 3)
    x1 = jax.random.normal(k_x1, (batch, seq, dim), jnp.float32)
    x2 = jax.random.normal(k_x2, (batch, seq, dim), jnp.float32)
    params = init_params(k_p, dim, depth_1, cross_depth, mlp_dim, mlp_dim_cross)

    # (mode, matmul operand dtype, tolerance): bf16 MXU is the default policy;
    # f32 and mode='x2' runs exercise the remaining code paths.
    checks = [
        ("x1", jnp.bfloat16, 2e-2),
        ("x1", jnp.float32, 2e-3),
        ("x2", jnp.bfloat16, 2e-2),
    ]
    for mode, dot_dtype, tol in checks:
        fwd = jax.jit(functools.partial(multiscale_apply, n_heads=n_heads, mode=mode,
                                        dot_dtype=dot_dtype, use_pallas=True))
        y = jax.block_until_ready(fwd(params, x1, x2))
        assert y.shape == (batch, seq, dim)
        y_ref = multiscale_apply(params, x1, x2, n_heads=n_heads, mode=mode,
                                 dot_dtype=dot_dtype, use_pallas=False)
        assert jnp.allclose(y, y_ref, atol=tol, rtol=tol), \
            f"mismatch vs reference (mode={mode}, dot_dtype={dot_dtype})"

    print("KERNEL_OK")
</pallas_src>

<mosaic_0001>
module attributes {stable_mosaic.version = 11 : i64} {
  func.func @kernel(%arg0: i32, %arg1: memref<1x8x128xf32, #tpu.memory_space<vmem>>, %arg2: memref<1x128xf32, #tpu.memory_space<vmem>>, %arg3: memref<1x128xf32, #tpu.memory_space<vmem>>, %arg4: memref<128x384xbf16, #tpu.memory_space<vmem>>, %arg5: memref<1x384xf32, #tpu.memory_space<vmem>>, %arg6: memref<128x128xbf16, #tpu.memory_space<vmem>>, %arg7: memref<1x128xf32, #tpu.memory_space<vmem>>, %arg8: memref<1x128xf32, #tpu.memory_space<vmem>>, %arg9: memref<1x128xf32, #tpu.memory_space<vmem>>, %arg10: memref<128x256xbf16, #tpu.memory_space<vmem>>, %arg11: memref<1x256xf32, #tpu.memory_space<vmem>>, %arg12: memref<256x128xbf16, #tpu.memory_space<vmem>>, %arg13: memref<1x128xf32, #tpu.memory_space<vmem>>, %arg14: memref<1x8x128xf32, #tpu.memory_space<vmem>>) attributes {dimension_semantics = [#tpu.dimension_semantics<parallel>], iteration_bounds = array<i64: 2>, scalar_prefetch = 0 : i64, scratch_operands = 0 : i64, tpu.core_type = #tpu.core_type<tc>, window_params = [{transform_indices = @transform_0, window_bounds = array<i64: 1, 8, 128>}, {pipeline_mode = #tpu.pipeline_mode<synchronous>, transform_indices = @transform_1, window_bounds = array<i64: 1, 128>}, {pipeline_mode = #tpu.pipeline_mode<synchronous>, transform_indices = @transform_2, window_bounds = array<i64: 1, 128>}, {pipeline_mode = #tpu.pipeline_mode<synchronous>, transform_indices = @transform_3, window_bounds = array<i64: 128, 384>}, {pipeline_mode = #tpu.pipeline_mode<synchronous>, transform_indices = @transform_4, window_bounds = array<i64: 1, 384>}, {pipeline_mode = #tpu.pipeline_mode<synchronous>, transform_indices = @transform_5, window_bounds = array<i64: 128, 128>}, {pipeline_mode = #tpu.pipeline_mode<synchronous>, transform_indices = @transform_6, window_bounds = array<i64: 1, 128>}, {pipeline_mode = #tpu.pipeline_mode<synchronous>, transform_indices = @transform_7, window_bounds = array<i64: 1, 128>}, {pipeline_mode = #tpu.pipeline_mode<synchronous>, transform_indices = @transform_8, window_bounds = array<i64: 1, 128>}, {pipeline_mode = #tpu.pipeline_mode<synchronous>, transform_indices = @transform_9, window_bounds = array<i64: 128, 256>}, {pipeline_mode = #tpu.pipeline_mode<synchronous>, transform_indices = @transform_10, window_bounds = array<i64: 1, 256>}, {pipeline_mode = #tpu.pipeline_mode<synchronous>, transform_indices = @transform_11, window_bounds = array<i64: 256, 128>}, {pipeline_mode = #tpu.pipeline_mode<synchronous>, transform_indices = @transform_12, window_bounds = array<i64: 1, 128>}, {transform_indices = @transform_13, window_bounds = array<i64: 1, 8, 128>}]} {
    %c0 = arith.constant 0 : index
    %c0_0 = arith.constant 0 : index
    %c0_1 = arith.constant 0 : index
    %0 = vector.load %arg1[%c0, %c0_0, %c0_1] : memref<1x8x128xf32, #tpu.memory_space<vmem>>, vector<1x8x128xf32>
    %1 = vector.shape_cast %0 : vector<1x8x128xf32> to vector<8x128xf32>
    %c0_2 = arith.constant 0 : index
    %c0_3 = arith.constant 0 : index
    %2 = vector.load %arg2[%c0_2, %c0_3] : memref<1x128xf32, #tpu.memory_space<vmem>>, vector<1x128xf32>
    %c0_4 = arith.constant 0 : index
    %c0_5 = arith.constant 0 : index
    %3 = vector.load %arg3[%c0_4, %c0_5] : memref<1x128xf32, #tpu.memory_space<vmem>>, vector<1x128xf32>
    %c0_6 = arith.constant 0 : index
    %c0_7 = arith.constant 0 : index
    %4 = vector.load %arg4[%c0_6, %c0_7] : memref<128x384xbf16, #tpu.memory_space<vmem>>, vector<128x384xbf16>
    %c0_8 = arith.constant 0 : index
    %c0_9 = arith.constant 0 : index
    %5 = vector.load %arg5[%c0_8, %c0_9] : memref<1x384xf32, #tpu.memory_space<vmem>>, vector<1x384xf32>
    %c0_10 = arith.constant 0 : index
    %c0_11 = arith.constant 0 : index
    %6 = vector.load %arg6[%c0_10, %c0_11] : memref<128x128xbf16, #tpu.memory_space<vmem>>, vector<128x128xbf16>
    %c0_12 = arith.constant 0 : index
    %c0_13 = arith.constant 0 : index
    %7 = vector.load %arg7[%c0_12, %c0_13] : memref<1x128xf32, #tpu.memory_space<vmem>>, vector<1x128xf32>
    %cst = arith.constant dense<0.000000e+00> : vector<8xf32>
    %8 = vector.multi_reduction <add>, %1, %cst [1] : vector<8x128xf32> to vector<8xf32>
    %9 = vector.shape_cast %8 : vector<8xf32> to vector<8x1xf32>
    %cst_14 = arith.constant 1.280000e+02 : f32
    %10 = vector.broadcast %cst_14 : f32 to vector<8x1xf32>
    %11 = arith.divf %9, %10 : vector<8x1xf32>
    %12 = vector.broadcast %11 : vector<8x1xf32> to vector<8x128xf32>
    %13 = arith.subf %1, %12 : vector<8x128xf32>
    %14 = arith.mulf %13, %13 : vector<8x128xf32>
    %cst_15 = arith.constant dense<0.000000e+00> : vector<8xf32>
    %15 = vector.multi_reduction <add>, %14, %cst_15 [1] : vector<8x128xf32> to vector<8xf32>
    %16 = vector.shape_cast %15 : vector<8xf32> to vector<8x1xf32>
    %cst_16 = arith.constant 1.280000e+02 : f32
    %17 = vector.broadcast %cst_16 : f32 to vector<8x1xf32>
    %18 = arith.divf %16, %17 : vector<8x1xf32>
    %19 = vector.broadcast %11 : vector<8x1xf32> to vector<8x128xf32>
    %20 = arith.subf %1, %19 : vector<8x128xf32>
    %cst_17 = arith.constant 9.99999974E-6 : f32
    %21 = vector.broadcast %cst_17 : f32 to vector<8x1xf32>
    %22 = arith.addf %18, %21 : vector<8x1xf32>
    %23 = math.rsqrt %22 : vector<8x1xf32>
    %24 = vector.broadcast %23 : vector<8x1xf32> to vector<8x128xf32>
    %25 = arith.mulf %20, %24 : vector<8x128xf32>
    %26 = vector.broadcast %2 : vector<1x128xf32> to vector<8x128xf32>
    %27 = arith.mulf %25, %26 : vector<8x128xf32>
    %28 = vector.broadcast %3 : vector<1x128xf32> to vector<8x128xf32>
    %29 = arith.addf %27, %28 : vector<8x128xf32>
    %30 = arith.truncf %29 : vector<8x128xf32> to vector<8x128xbf16>
    %cst_18 = arith.constant dense<0.000000e+00> : vector<8x384xf32>
    %31 = tpu.matmul %30, %4, %cst_18 {dimension_numbers = #tpu.dot_dimension_numbers<[1], [0], [0], [1], [0, 0, 1, 1], [], []>} : vector<8x128xbf16>, vector<128x384xbf16>, vector<8x384xf32> -> vector<8x384xf32>
    %32 = vector.broadcast %5 : vector<1x384xf32> to vector<8x384xf32>
    %33 = arith.addf %31, %32 : vector<8x384xf32>
    %34 = vector.extract_strided_slice %33 {offsets = [0, 0], sizes = [8, 128], strides = [1, 1]} : vector<8x384xf32> to vector<8x128xf32>
    %35 = vector.extract_strided_slice %33 {offsets = [0, 128], sizes = [8, 128], strides = [1, 1]} : vector<8x384xf32> to vector<8x128xf32>
    %36 = vector.extract_strided_slice %33 {offsets = [0, 256], sizes = [8, 128], strides = [1, 1]} : vector<8x384xf32> to vector<8x128xf32>
    %cst_19 = arith.constant 0.176776692 : f32
    %37 = vector.broadcast %cst_19 : f32 to vector<8x128xf32>
    %38 = arith.mulf %34, %37 : vector<8x128xf32>
    %39 = arith.truncf %38 : vector<8x128xf32> to vector<8x128xbf16>
    %40 = arith.truncf %35 : vector<8x128xf32> to vector<8x128xbf16>
    %41 = arith.truncf %36 : vector<8x128xf32> to vector<8x128xbf16>
    %cst_20 = arith.constant 0.000000e+00 : f32
    %42 = vector.broadcast %cst_20 : f32 to vector<8x128xf32>
    %43 = vector.extract_strided_slice %39 {offsets = [0, 0], sizes = [8, 32], strides = [1, 1]} : vector<8x128xbf16> to vector<8x32xbf16>
    %44 = vector.extract_strided_slice %40 {offsets = [0, 0], sizes = [8, 32], strides = [1, 1]} : vector<8x128xbf16> to vector<8x32xbf16>
    %cst_21 = arith.constant dense<0.000000e+00> : vector<8x8xf32>
    %45 = tpu.matmul %43, %44, %cst_21 {dimension_numbers = #tpu.dot_dimension_numbers<[1], [1], [0], [0], [0, 0, 1, 0], [], []>} : vector<8x32xbf16>, vector<8x32xbf16>, vector<8x8xf32> -> vector<8x8xf32>
    %cst_22 = arith.constant dense<0xFF800000> : vector<8xf32>
    %46 = vector.multi_reduction <maximumf>, %45, %cst_22 [1] : vector<8x8xf32> to vector<8xf32>
    %47 = vector.shape_cast %46 : vector<8xf32> to vector<8x1xf32>
    %48 = vector.broadcast %47 : vector<8x1xf32> to vector<8x8xf32>
    %49 = arith.subf %45, %48 : vector<8x8xf32>
    %50 = math.exp %49 : vector<8x8xf32>
    %cst_23 = arith.constant dense<0.000000e+00> : vector<8xf32>
    %51 = vector.multi_reduction <add>, %50, %cst_23 [1] : vector<8x8xf32> to vector<8xf32>
    %52 = vector.shape_cast %51 : vector<8xf32> to vector<8x1xf32>
    %53 = vector.broadcast %52 : vector<8x1xf32> to vector<8x8xf32>
    %54 = arith.divf %50, %53 : vector<8x8xf32>
    %55 = arith.truncf %54 : vector<8x8xf32> to vector<8x8xbf16>
    %56 = vector.extract_strided_slice %41 {offsets = [0, 0], sizes = [8, 32], strides = [1, 1]} : vector<8x128xbf16> to vector<8x32xbf16>
    %cst_24 = arith.constant dense<0.000000e+00> : vector<8x32xf32>
    %57 = tpu.matmul %55, %56, %cst_24 {dimension_numbers = #tpu.dot_dimension_numbers<[1], [0], [0], [1], [0, 0, 1, 1], [], []>} : vector<8x8xbf16>, vector<8x32xbf16>, vector<8x32xf32> -> vector<8x32xf32>
    %58 = arith.truncf %57 : vector<8x32xf32> to vector<8x32xbf16>
    %59 = vector.extract_strided_slice %6 {offsets = [0, 0], sizes = [32, 128], strides = [1, 1]} : vector<128x128xbf16> to vector<32x128xbf16>
    %cst_25 = arith.constant dense<0.000000e+00> : vector<8x128xf32>
    %60 = tpu.matmul %58, %59, %cst_25 {dimension_numbers = #tpu.dot_dimension_numbers<[1], [0], [0], [1], [0, 0, 1, 1], [], []>} : vector<8x32xbf16>, vector<32x128xbf16>, vector<8x128xf32> -> vector<8x128xf32>
    %61 = arith.addf %42, %60 : vector<8x128xf32>
    %62 = vector.extract_strided_slice %39 {offsets = [0, 32], sizes = [8, 32], strides = [1, 1]} : vector<8x128xbf16> to vector<8x32xbf16>
    %63 = vector.extract_strided_slice %40 {offsets = [0, 32], sizes = [8, 32], strides = [1, 1]} : vector<8x128xbf16> to vector<8x32xbf16>
    %cst_26 = arith.constant dense<0.000000e+00> : vector<8x8xf32>
    %64 = tpu.matmul %62, %63, %cst_26 {dimension_numbers = #tpu.dot_dimension_numbers<[1], [1], [0], [0], [0, 0, 1, 0], [], []>} : vector<8x32xbf16>, vector<8x32xbf16>, vector<8x8xf32> -> vector<8x8xf32>
    %cst_27 = arith.constant dense<0xFF800000> : vector<8xf32>
    %65 = vector.multi_reduction <maximumf>, %64, %cst_27 [1] : vector<8x8xf32> to vector<8xf32>
    %66 = vector.shape_cast %65 : vector<8xf32> to vector<8x1xf32>
    %67 = vector.broadcast %66 : vector<8x1xf32> to vector<8x8xf32>
    %68 = arith.subf %64, %67 : vector<8x8xf32>
    %69 = math.exp %68 : vector<8x8xf32>
    %cst_28 = arith.constant dense<0.000000e+00> : vector<8xf32>
    %70 = vector.multi_reduction <add>, %69, %cst_28 [1] : vector<8x8xf32> to vector<8xf32>
    %71 = vector.shape_cast %70 : vector<8xf32> to vector<8x1xf32>
    %72 = vector.broadcast %71 : vector<8x1xf32> to vector<8x8xf32>
    %73 = arith.divf %69, %72 : vector<8x8xf32>
    %74 = arith.truncf %73 : vector<8x8xf32> to vector<8x8xbf16>
    %75 = vector.extract_strided_slice %41 {offsets = [0, 32], sizes = [8, 32], strides = [1, 1]} : vector<8x128xbf16> to vector<8x32xbf16>
    %cst_29 = arith.constant dense<0.000000e+00> : vector<8x32xf32>
    %76 = tpu.matmul %74, %75, %cst_29 {dimension_numbers = #tpu.dot_dimension_numbers<[1], [0], [0], [1], [0, 0, 1, 1], [], []>} : vector<8x8xbf16>, vector<8x32xbf16>, vector<8x32xf32> -> vector<8x32xf32>
    %77 = arith.truncf %76 : vector<8x32xf32> to vector<8x32xbf16>
    %78 = vector.extract_strided_slice %6 {offsets = [32, 0], sizes = [32, 128], strides = [1, 1]} : vector<128x128xbf16> to vector<32x128xbf16>
    %cst_30 = arith.constant dense<0.000000e+00> : vector<8x128xf32>
    %79 = tpu.matmul %77, %78, %cst_30 {dimension_numbers = #tpu.dot_dimension_numbers<[1], [0], [0], [1], [0, 0, 1, 1], [], []>} : vector<8x32xbf16>, vector<32x128xbf16>, vector<8x128xf32> -> vector<8x128xf32>
    %80 = arith.addf %61, %79 : vector<8x128xf32>
    %81 = vector.extract_strided_slice %39 {offsets = [0, 64], sizes = [8, 32], strides = [1, 1]} : vector<8x128xbf16> to vector<8x32xbf16>
    %82 = vector.extract_strided_slice %40 {offsets = [0, 64], sizes = [8, 32], strides = [1, 1]} : vector<8x128xbf16> to vector<8x32xbf16>
    %cst_31 = arith.constant dense<0.000000e+00> : vector<8x8xf32>
    %83 = tpu.matmul %81, %82, %cst_31 {dimension_numbers = #tpu.dot_dimension_numbers<[1], [1], [0], [0], [0, 0, 1, 0], [], []>} : vector<8x32xbf16>, vector<8x32xbf16>, vector<8x8xf32> -> vector<8x8xf32>
    %cst_32 = arith.constant dense<0xFF800000> : vector<8xf32>
    %84 = vector.multi_reduction <maximumf>, %83, %cst_32 [1] : vector<8x8xf32> to vector<8xf32>
    %85 = vector.shape_cast %84 : vector<8xf32> to vector<8x1xf32>
    %86 = vector.broadcast %85 : vector<8x1xf32> to vector<8x8xf32>
    %87 = arith.subf %83, %86 : vector<8x8xf32>
    %88 = math.exp %87 : vector<8x8xf32>
    %cst_33 = arith.constant dense<0.000000e+00> : vector<8xf32>
    %89 = vector.multi_reduction <add>, %88, %cst_33 [1] : vector<8x8xf32> to vector<8xf32>
    %90 = vector.shape_cast %89 : vector<8xf32> to vector<8x1xf32>
    %91 = vector.broadcast %90 : vector<8x1xf32> to vector<8x8xf32>
    %92 = arith.divf %88, %91 : vector<8x8xf32>
    %93 = arith.truncf %92 : vector<8x8xf32> to vector<8x8xbf16>
    %94 = vector.extract_strided_slice %41 {offsets = [0, 64], sizes = [8, 32], strides = [1, 1]} : vector<8x128xbf16> to vector<8x32xbf16>
    %cst_34 = arith.constant dense<0.000000e+00> : vector<8x32xf32>
    %95 = tpu.matmul %93, %94, %cst_34 {dimension_numbers = #tpu.dot_dimension_numbers<[1], [0], [0], [1], [0, 0, 1, 1], [], []>} : vector<8x8xbf16>, vector<8x32xbf16>, vector<8x32xf32> -> vector<8x32xf32>
    %96 = arith.truncf %95 : vector<8x32xf32> to vector<8x32xbf16>
    %97 = vector.extract_strided_slice %6 {offsets = [64, 0], sizes = [32, 128], strides = [1, 1]} : vector<128x128xbf16> to vector<32x128xbf16>
    %cst_35 = arith.constant dense<0.000000e+00> : vector<8x128xf32>
    %98 = tpu.matmul %96, %97, %cst_35 {dimension_numbers = #tpu.dot_dimension_numbers<[1], [0], [0], [1], [0, 0, 1, 1], [], []>} : vector<8x32xbf16>, vector<32x128xbf16>, vector<8x128xf32> -> vector<8x128xf32>
    %99 = arith.addf %80, %98 : vector<8x128xf32>
    %100 = vector.extract_strided_slice %39 {offsets = [0, 96], sizes = [8, 32], strides = [1, 1]} : vector<8x128xbf16> to vector<8x32xbf16>
    %101 = vector.extract_strided_slice %40 {offsets = [0, 96], sizes = [8, 32], strides = [1, 1]} : vector<8x128xbf16> to vector<8x32xbf16>
    %cst_36 = arith.constant dense<0.000000e+00> : vector<8x8xf32>
    %102 = tpu.matmul %100, %101, %cst_36 {dimension_numbers = #tpu.dot_dimension_numbers<[1], [1], [0], [0], [0, 0, 1, 0], [], []>} : vector<8x32xbf16>, vector<8x32xbf16>, vector<8x8xf32> -> vector<8x8xf32>
    %cst_37 = arith.constant dense<0xFF800000> : vector<8xf32>
    %103 = vector.multi_reduction <maximumf>, %102, %cst_37 [1] : vector<8x8xf32> to vector<8xf32>
    %104 = vector.shape_cast %103 : vector<8xf32> to vector<8x1xf32>
    %105 = vector.broadcast %104 : vector<8x1xf32> to vector<8x8xf32>
    %106 = arith.subf %102, %105 : vector<8x8xf32>
    %107 = math.exp %106 : vector<8x8xf32>
    %cst_38 = arith.constant dense<0.000000e+00> : vector<8xf32>
    %108 = vector.multi_reduction <add>, %107, %cst_38 [1] : vector<8x8xf32> to vector<8xf32>
    %109 = vector.shape_cast %108 : vector<8xf32> to vector<8x1xf32>
    %110 = vector.broadcast %109 : vector<8x1xf32> to vector<8x8xf32>
    %111 = arith.divf %107, %110 : vector<8x8xf32>
    %112 = arith.truncf %111 : vector<8x8xf32> to vector<8x8xbf16>
    %113 = vector.extract_strided_slice %41 {offsets = [0, 96], sizes = [8, 32], strides = [1, 1]} : vector<8x128xbf16> to vector<8x32xbf16>
    %cst_39 = arith.constant dense<0.000000e+00> : vector<8x32xf32>
    %114 = tpu.matmul %112, %113, %cst_39 {dimension_numbers = #tpu.dot_dimension_numbers<[1], [0], [0], [1], [0, 0, 1, 1], [], []>} : vector<8x8xbf16>, vector<8x32xbf16>, vector<8x32xf32> -> vector<8x32xf32>
    %115 = arith.truncf %114 : vector<8x32xf32> to vector<8x32xbf16>
    %116 = vector.extract_strided_slice %6 {offsets = [96, 0], sizes = [32, 128], strides = [1, 1]} : vector<128x128xbf16> to vector<32x128xbf16>
    %cst_40 = arith.constant dense<0.000000e+00> : vector<8x128xf32>
    %117 = tpu.matmul %115, %116, %cst_40 {dimension_numbers = #tpu.dot_dimension_numbers<[1], [0], [0], [1], [0, 0, 1, 1], [], []>} : vector<8x32xbf16>, vector<32x128xbf16>, vector<8x128xf32> -> vector<8x128xf32>
    %118 = arith.addf %99, %117 : vector<8x128xf32>
    %119 = vector.broadcast %7 : vector<1x128xf32> to vector<8x128xf32>
    %120 = arith.addf %118, %119 : vector<8x128xf32>
    %121 = arith.addf %1, %120 : vector<8x128xf32>
    %c0_41 = arith.constant 0 : index
    %c0_42 = arith.constant 0 : index
    %122 = vector.load %arg8[%c0_41, %c0_42] : memref<1x128xf32, #tpu.memory_space<vmem>>, vector<1x128xf32>
    %c0_43 = arith.constant 0 : index
    %c0_44 = arith.constant 0 : index
    %123 = vector.load %arg9[%c0_43, %c0_44] : memref<1x128xf32, #tpu.memory_space<vmem>>, vector<1x128xf32>
    %c0_45 = arith.constant 0 : index
    %c0_46 = arith.constant 0 : index
    %124 = vector.load %arg10[%c0_45, %c0_46] : memref<128x256xbf16, #tpu.memory_space<vmem>>, vector<128x256xbf16>
    %c0_47 = arith.constant 0 : index
    %c0_48 = arith.constant 0 : index
    %125 = vector.load %arg11[%c0_47, %c0_48] : memref<1x256xf32, #tpu.memory_space<vmem>>, vector<1x256xf32>
    %c0_49 = arith.constant 0 : index
    %c0_50 = arith.constant 0 : index
    %126 = vector.load %arg12[%c0_49, %c0_50] : memref<256x128xbf16, #tpu.memory_space<vmem>>, vector<256x128xbf16>
    %c0_51 = arith.constant 0 : index
    %c0_52 = arith.constant 0 : index
    %127 = vector.load %arg13[%c0_51, %c0_52] : memref<1x128xf32, #tpu.memory_space<vmem>>, vector<1x128xf32>
    %cst_53 = arith.constant dense<0.000000e+00> : vector<8xf32>
    %128 = vector.multi_reduction <add>, %121, %cst_53 [1] : vector<8x128xf32> to vector<8xf32>
    %129 = vector.shape_cast %128 : vector<8xf32> to vector<8x1xf32>
    %cst_54 = arith.constant 1.280000e+02 : f32
    %130 = vector.broadcast %cst_54 : f32 to vector<8x1xf32>
    %131 = arith.divf %129, %130 : vector<8x1xf32>
    %132 = vector.broadcast %131 : vector<8x1xf32> to vector<8x128xf32>
    %133 = arith.subf %121, %132 : vector<8x128xf32>
    %134 = arith.mulf %133, %133 : vector<8x128xf32>
    %cst_55 = arith.constant dense<0.000000e+00> : vector<8xf32>
    %135 = vector.multi_reduction <add>, %134, %cst_55 [1] : vector<8x128xf32> to vector<8xf32>
    %136 = vector.shape_cast %135 : vector<8xf32> to vector<8x1xf32>
    %cst_56 = arith.constant 1.280000e+02 : f32
    %137 = vector.broadcast %cst_56 : f32 to vector<8x1xf32>
    %138 = arith.divf %136, %137 : vector<8x1xf32>
    %139 = vector.broadcast %131 : vector<8x1xf32> to vector<8x128xf32>
    %140 = arith.subf %121, %139 : vector<8x128xf32>
    %cst_57 = arith.constant 9.99999974E-6 : f32
    %141 = vector.broadcast %cst_57 : f32 to vector<8x1xf32>
    %142 = arith.addf %138, %141 : vector<8x1xf32>
    %143 = math.rsqrt %142 : vector<8x1xf32>
    %144 = vector.broadcast %143 : vector<8x1xf32> to vector<8x128xf32>
    %145 = arith.mulf %140, %144 : vector<8x128xf32>
    %146 = vector.broadcast %122 : vector<1x128xf32> to vector<8x128xf32>
    %147 = arith.mulf %145, %146 : vector<8x128xf32>
    %148 = vector.broadcast %123 : vector<1x128xf32> to vector<8x128xf32>
    %149 = arith.addf %147, %148 : vector<8x128xf32>
    %150 = arith.truncf %149 : vector<8x128xf32> to vector<8x128xbf16>
    %cst_58 = arith.constant dense<0.000000e+00> : vector<8x256xf32>
    %151 = tpu.matmul %150, %124, %cst_58 {dimension_numbers = #tpu.dot_dimension_numbers<[1], [0], [0], [1], [0, 0, 1, 1], [], []>} : vector<8x128xbf16>, vector<128x256xbf16>, vector<8x256xf32> -> vector<8x256xf32>
    %152 = vector.broadcast %125 : vector<1x256xf32> to vector<8x256xf32>
    %153 = arith.addf %151, %152 : vector<8x256xf32>
    %cst_59 = arith.constant 5.000000e-01 : f32
    %154 = vector.broadcast %cst_59 : f32 to vector<8x256xf32>
    %155 = arith.mulf %154, %153 : vector<8x256xf32>
    %cst_60 = arith.constant 0.707106769 : f32
    %156 = vector.broadcast %cst_60 : f32 to vector<8x256xf32>
    %157 = arith.mulf %153, %156 : vector<8x256xf32>
    %158 = math.erf %157 : vector<8x256xf32>
    %cst_61 = arith.constant 1.000000e+00 : f32
    %159 = vector.broadcast %cst_61 : f32 to vector<8x256xf32>
    %160 = arith.addf %159, %158 : vector<8x256xf32>
    %161 = arith.mulf %155, %160 : vector<8x256xf32>
    %162 = arith.truncf %161 : vector<8x256xf32> to vector<8x256xbf16>
    %cst_62 = arith.constant dense<0.000000e+00> : vector<8x128xf32>
    %163 = tpu.matmul %162, %126, %cst_62 {dimension_numbers = #tpu.dot_dimension_numbers<[1], [0], [0], [1], [0, 0, 1, 1], [], []>} : vector<8x256xbf16>, vector<256x128xbf16>, vector<8x128xf32> -> vector<8x128xf32>
    %164 = arith.addf %121, %163 : vector<8x128xf32>
    %165 = vector.broadcast %127 : vector<1x128xf32> to vector<8x128xf32>
    %166 = arith.addf %164, %165 : vector<8x128xf32>
    %c0_63 = arith.constant 0 : index
    %c0_64 = arith.constant 0 : index
    %c0_65 = arith.constant 0 : index
    %167 = vector.load %arg14[%c0_63, %c0_64, %c0_65] : memref<1x8x128xf32, #tpu.memory_space<vmem>>, vector<1x8x128xf32>
    %168 = vector.shape_cast %167 : vector<1x8x128xf32> to vector<8x128xf32>
    %169 = vector.shape_cast %166 : vector<8x128xf32> to vector<1x8x128xf32>
    tpu.vector_store %arg14[%c0_63, %c0_64, %c0_65], %169 {strides = array<i32>} : memref<1x8x128xf32, #tpu.memory_space<vmem>>, vector<1x8x128xf32>,
    return
  }
  func.func @transform_0(%arg0: i32) -> (i32, i32, i32) {
    %c0_i32 = arith.constant 0 : i32
    %c0_i32_0 = arith.constant 0 : i32
    %c0_i32_1 = arith.constant 0 : i32
    return %arg0, %c0_i32, %c0_i32_0 : i32, i32, i32
  }
  func.func @transform_1(%arg0: i32) -> (i32, i32) {
    %c0_i32 = arith.constant 0 : i32
    %c0_i32_0 = arith.constant 0 : i32
    %c0_i32_1 = arith.constant 0 : i32
    return %c0_i32, %c0_i32_0 : i32, i32
  }
  func.func @transform_2(%arg0: i32) -> (i32, i32) {
    %c0_i32 = arith.constant 0 : i32
    %c0_i32_0 = arith.constant 0 : i32
    %c0_i32_1 = arith.constant 0 : i32
    return %c0_i32, %c0_i32_0 : i32, i32
  }
  func.func @transform_3(%arg0: i32) -> (i32, i32) {
    %c0_i32 = arith.constant 0 : i32
    %c0_i32_0 = arith.constant 0 : i32
    %c0_i32_1 = arith.constant 0 : i32
    return %c0_i32, %c0_i32_0 : i32, i32
  }
  func.func @transform_4(%arg0: i32) -> (i32, i32) {
    %c0_i32 = arith.constant 0 : i32
    %c0_i32_0 = arith.constant 0 : i32
    %c0_i32_1 = arith.constant 0 : i32
    return %c0_i32, %c0_i32_0 : i32, i32
  }
  func.func @transform_5(%arg0: i32) -> (i32, i32) {
    %c0_i32 = arith.constant 0 : i32
    %c0_i32_0 = arith.constant 0 : i32
    %c0_i32_1 = arith.constant 0 : i32
    return %c0_i32, %c0_i32_0 : i32, i32
  }
  func.func @transform_6(%arg0: i32) -> (i32, i32) {
    %c0_i32 = arith.constant 0 : i32
    %c0_i32_0 = arith.constant 0 : i32
    %c0_i32_1 = arith.constant 0 : i32
    return %c0_i32, %c0_i32_0 : i32, i32
  }
  func.func @transform_7(%arg0: i32) -> (i32, i32) {
    %c0_i32 = arith.constant 0 : i32
    %c0_i32_0 = arith.constant 0 : i32
    %c0_i32_1 = arith.constant 0 : i32
    return %c0_i32, %c0_i32_0 : i32, i32
  }
  func.func @transform_8(%arg0: i32) -> (i32, i32) {
    %c0_i32 = arith.constant 0 : i32
    %c0_i32_0 = arith.constant 0 : i32
    %c0_i32_1 = arith.constant 0 : i32
    return %c0_i32, %c0_i32_0 : i32, i32
  }
  func.func @transform_9(%arg0: i32) -> (i32, i32) {
    %c0_i32 = arith.constant 0 : i32
    %c0_i32_0 = arith.constant 0 : i32
    %c0_i32_1 = arith.constant 0 : i32
    return %c0_i32, %c0_i32_0 : i32, i32
  }
  func.func @transform_10(%arg0: i32) -> (i32, i32) {
    %c0_i32 = arith.constant 0 : i32
    %c0_i32_0 = arith.constant 0 : i32
    %c0_i32_1 = arith.constant 0 : i32
    return %c0_i32, %c0_i32_0 : i32, i32
  }
  func.func @transform_11(%arg0: i32) -> (i32, i32) {
    %c0_i32 = arith.constant 0 : i32
    %c0_i32_0 = arith.constant 0 : i32
    %c0_i32_1 = arith.constant 0 : i32
    return %c0_i32, %c0_i32_0 : i32, i32
  }
  func.func @transform_12(%arg0: i32) -> (i32, i32) {
    %c0_i32 = arith.constant 0 : i32
    %c0_i32_0 = arith.constant 0 : i32
    %c0_i32_1 = arith.constant 0 : i32
    return %c0_i32, %c0_i32_0 : i32, i32
  }
  func.func @transform_13(%arg0: i32) -> (i32, i32, i32) {
    %c0_i32 = arith.constant 0 : i32
    %c0_i32_0 = arith.constant 0 : i32
    %c0_i32_1 = arith.constant 0 : i32
    return %arg0, %c0_i32, %c0_i32_0 : i32, i32, i32
  }
}

module attributes {stable_mosaic.version = 11 : i64} {
  func.func @kernel(%arg0: i32, %arg1: memref<1x8x128xf32, #tpu.memory_space<vmem>>, %arg2: memref<1x8x128xf32, #tpu.memory_space<vmem>>, %arg3: memref<1x128xf32, #tpu.memory_space<vmem>>, %arg4: memref<1x128xf32, #tpu.memory_space<vmem>>, %arg5: memref<128x128xbf16, #tpu.memory_space<vmem>>, %arg6: memref<1x128xf32, #tpu.memory_space<vmem>>, %arg7: memref<128x256xbf16, #tpu.memory_space<vmem>>, %arg8: memref<1x256xf32, #tpu.memory_space<vmem>>, %arg9: memref<128x128xbf16, #tpu.memory_space<vmem>>, %arg10: memref<1x128xf32, #tpu.memory_space<vmem>>, %arg11: memref<1x128xf32, #tpu.memory_space<vmem>>, %arg12: memref<1x128xf32, #tpu.memory_space<vmem>>, %arg13: memref<128x256xbf16, #tpu.memory_space<vmem>>, %arg14: memref<1x256xf32, #tpu.memory_space<vmem>>, %arg15: memref<256x128xbf16, #tpu.memory_space<vmem>>, %arg16: memref<1x128xf32, #tpu.memory_space<vmem>>, %arg17: memref<1x8x128xf32, #tpu.memory_space<vmem>>) attributes {dimension_semantics = [#tpu.dimension_semantics<parallel>], iteration_bounds = array<i64: 2>, scalar_prefetch = 0 : i64, scratch_operands = 0 : i64, tpu.core_type = #tpu.core_type<tc>, window_params = [{transform_indices = @transform_0, window_bounds = array<i64: 1, 8, 128>}, {transform_indices = @transform_1, window_bounds = array<i64: 1, 8, 128>}, {pipeline_mode = #tpu.pipeline_mode<synchronous>, transform_indices = @transform_2, window_bounds = array<i64: 1, 128>}, {pipeline_mode = #tpu.pipeline_mode<synchronous>, transform_indices = @transform_3, window_bounds = array<i64: 1, 128>}, {pipeline_mode = #tpu.pipeline_mode<synchronous>, transform_indices = @transform_4, window_bounds = array<i64: 128, 128>}, {pipeline_mode = #tpu.pipeline_mode<synchronous>, transform_indices = @transform_5, window_bounds = array<i64: 1, 128>}, {pipeline_mode = #tpu.pipeline_mode<synchronous>, transform_indices = @transform_6, window_bounds = array<i64: 128, 256>}, {pipeline_mode = #tpu.pipeline_mode<synchronous>, transform_indices = @transform_7, window_bounds = array<i64: 1, 256>}, {pipeline_mode = #tpu.pipeline_mode<synchronous>, transform_indices = @transform_8, window_bounds = array<i64: 128, 128>}, {pipeline_mode = #tpu.pipeline_mode<synchronous>, transform_indices = @transform_9, window_bounds = array<i64: 1, 128>}, {pipeline_mode = #tpu.pipeline_mode<synchronous>, transform_indices = @transform_10, window_bounds = array<i64: 1, 128>}, {pipeline_mode = #tpu.pipeline_mode<synchronous>, transform_indices = @transform_11, window_bounds = array<i64: 1, 128>}, {pipeline_mode = #tpu.pipeline_mode<synchronous>, transform_indices = @transform_12, window_bounds = array<i64: 128, 256>}, {pipeline_mode = #tpu.pipeline_mode<synchronous>, transform_indices = @transform_13, window_bounds = array<i64: 1, 256>}, {pipeline_mode = #tpu.pipeline_mode<synchronous>, transform_indices = @transform_14, window_bounds = array<i64: 256, 128>}, {pipeline_mode = #tpu.pipeline_mode<synchronous>, transform_indices = @transform_15, window_bounds = array<i64: 1, 128>}, {transform_indices = @transform_16, window_bounds = array<i64: 1, 8, 128>}]} {
    %c0 = arith.constant 0 : index
    %c0_0 = arith.constant 0 : index
    %c0_1 = arith.constant 0 : index
    %0 = vector.load %arg1[%c0, %c0_0, %c0_1] : memref<1x8x128xf32, #tpu.memory_space<vmem>>, vector<1x8x128xf32>
    %1 = vector.shape_cast %0 : vector<1x8x128xf32> to vector<8x128xf32>
    %c0_2 = arith.constant 0 : index
    %c0_3 = arith.constant 0 : index
    %c0_4 = arith.constant 0 : index
    %2 = vector.load %arg2[%c0_2, %c0_3, %c0_4] : memref<1x8x128xf32, #tpu.memory_space<vmem>>, vector<1x8x128xf32>
    %3 = vector.shape_cast %2 : vector<1x8x128xf32> to vector<8x128xf32>
    %c0_5 = arith.constant 0 : index
    %c0_6 = arith.constant 0 : index
    %4 = vector.load %arg3[%c0_5, %c0_6] : memref<1x128xf32, #tpu.memory_space<vmem>>, vector<1x128xf32>
    %c0_7 = arith.constant 0 : index
    %c0_8 = arith.constant 0 : index
    %5 = vector.load %arg4[%c0_7, %c0_8] : memref<1x128xf32, #tpu.memory_space<vmem>>, vector<1x128xf32>
    %c0_9 = arith.constant 0 : index
    %c0_10 = arith.constant 0 : index
    %6 = vector.load %arg5[%c0_9, %c0_10] : memref<128x128xbf16, #tpu.memory_space<vmem>>, vector<128x128xbf16>
    %c0_11 = arith.constant 0 : index
    %c0_12 = arith.constant 0 : index
    %7 = vector.load %arg6[%c0_11, %c0_12] : memref<1x128xf32, #tpu.memory_space<vmem>>, vector<1x128xf32>
    %c0_13 = arith.constant 0 : index
    %c0_14 = arith.constant 0 : index
    %8 = vector.load %arg7[%c0_13, %c0_14] : memref<128x256xbf16, #tpu.memory_space<vmem>>, vector<128x256xbf16>
    %c0_15 = arith.constant 0 : index
    %c0_16 = arith.constant 0 : index
    %9 = vector.load %arg8[%c0_15, %c0_16] : memref<1x256xf32, #tpu.memory_space<vmem>>, vector<1x256xf32>
    %c0_17 = arith.constant 0 : index
    %c0_18 = arith.constant 0 : index
    %10 = vector.load %arg9[%c0_17, %c0_18] : memref<128x128xbf16, #tpu.memory_space<vmem>>, vector<128x128xbf16>
    %c0_19 = arith.constant 0 : index
    %c0_20 = arith.constant 0 : index
    %11 = vector.load %arg10[%c0_19, %c0_20] : memref<1x128xf32, #tpu.memory_space<vmem>>, vector<1x128xf32>
    %cst = arith.constant dense<0.000000e+00> : vector<8xf32>
    %12 = vector.multi_reduction <add>, %1, %cst [1] : vector<8x128xf32> to vector<8xf32>
    %13 = vector.shape_cast %12 : vector<8xf32> to vector<8x1xf32>
    %cst_21 = arith.constant 1.280000e+02 : f32
    %14 = vector.broadcast %cst_21 : f32 to vector<8x1xf32>
    %15 = arith.divf %13, %14 : vector<8x1xf32>
    %16 = vector.broadcast %15 : vector<8x1xf32> to vector<8x128xf32>
    %17 = arith.subf %1, %16 : vector<8x128xf32>
    %18 = arith.mulf %17, %17 : vector<8x128xf32>
    %cst_22 = arith.constant dense<0.000000e+00> : vector<8xf32>
    %19 = vector.multi_reduction <add>, %18, %cst_22 [1] : vector<8x128xf32> to vector<8xf32>
    %20 = vector.shape_cast %19 : vector<8xf32> to vector<8x1xf32>
    %cst_23 = arith.constant 1.280000e+02 : f32
    %21 = vector.broadcast %cst_23 : f32 to vector<8x1xf32>
    %22 = arith.divf %20, %21 : vector<8x1xf32>
    %23 = vector.broadcast %15 : vector<8x1xf32> to vector<8x128xf32>
    %24 = arith.subf %1, %23 : vector<8x128xf32>
    %cst_24 = arith.constant 9.99999974E-6 : f32
    %25 = vector.broadcast %cst_24 : f32 to vector<8x1xf32>
    %26 = arith.addf %22, %25 : vector<8x1xf32>
    %27 = math.rsqrt %26 : vector<8x1xf32>
    %28 = vector.broadcast %27 : vector<8x1xf32> to vector<8x128xf32>
    %29 = arith.mulf %24, %28 : vector<8x128xf32>
    %30 = vector.broadcast %4 : vector<1x128xf32> to vector<8x128xf32>
    %31 = arith.mulf %29, %30 : vector<8x128xf32>
    %32 = vector.broadcast %5 : vector<1x128xf32> to vector<8x128xf32>
    %33 = arith.addf %31, %32 : vector<8x128xf32>
    %cst_25 = arith.constant dense<0.000000e+00> : vector<8xf32>
    %34 = vector.multi_reduction <add>, %3, %cst_25 [1] : vector<8x128xf32> to vector<8xf32>
    %35 = vector.shape_cast %34 : vector<8xf32> to vector<8x1xf32>
    %cst_26 = arith.constant 1.280000e+02 : f32
    %36 = vector.broadcast %cst_26 : f32 to vector<8x1xf32>
    %37 = arith.divf %35, %36 : vector<8x1xf32>
    %38 = vector.broadcast %37 : vector<8x1xf32> to vector<8x128xf32>
    %39 = arith.subf %3, %38 : vector<8x128xf32>
    %40 = arith.mulf %39, %39 : vector<8x128xf32>
    %cst_27 = arith.constant dense<0.000000e+00> : vector<8xf32>
    %41 = vector.multi_reduction <add>, %40, %cst_27 [1] : vector<8x128xf32> to vector<8xf32>
    %42 = vector.shape_cast %41 : vector<8xf32> to vector<8x1xf32>
    %cst_28 = arith.constant 1.280000e+02 : f32
    %43 = vector.broadcast %cst_28 : f32 to vector<8x1xf32>
    %44 = arith.divf %42, %43 : vector<8x1xf32>
    %45 = vector.broadcast %37 : vector<8x1xf32> to vector<8x128xf32>
    %46 = arith.subf %3, %45 : vector<8x128xf32>
    %cst_29 = arith.constant 9.99999974E-6 : f32
    %47 = vector.broadcast %cst_29 : f32 to vector<8x1xf32>
    %48 = arith.addf %44, %47 : vector<8x1xf32>
    %49 = math.rsqrt %48 : vector<8x1xf32>
    %50 = vector.broadcast %49 : vector<8x1xf32> to vector<8x128xf32>
    %51 = arith.mulf %46, %50 : vector<8x128xf32>
    %52 = vector.broadcast %4 : vector<1x128xf32> to vector<8x128xf32>
    %53 = arith.mulf %51, %52 : vector<8x128xf32>
    %54 = vector.broadcast %5 : vector<1x128xf32> to vector<8x128xf32>
    %55 = arith.addf %53, %54 : vector<8x128xf32>
    %56 = arith.truncf %33 : vector<8x128xf32> to vector<8x128xbf16>
    %cst_30 = arith.constant dense<0.000000e+00> : vector<8x128xf32>
    %57 = tpu.matmul %56, %6, %cst_30 {dimension_numbers = #tpu.dot_dimension_numbers<[1], [0], [0], [1], [0, 0, 1, 1], [], []>} : vector<8x128xbf16>, vector<128x128xbf16>, vector<8x128xf32> -> vector<8x128xf32>
    %58 = vector.broadcast %7 : vector<1x128xf32> to vector<8x128xf32>
    %59 = arith.addf %57, %58 : vector<8x128xf32>
    %60 = arith.truncf %55 : vector<8x128xf32> to vector<8x128xbf16>
    %cst_31 = arith.constant dense<0.000000e+00> : vector<8x256xf32>
    %61 = tpu.matmul %60, %8, %cst_31 {dimension_numbers = #tpu.dot_dimension_numbers<[1], [0], [0], [1], [0, 0, 1, 1], [], []>} : vector<8x128xbf16>, vector<128x256xbf16>, vector<8x256xf32> -> vector<8x256xf32>
    %62 = vector.broadcast %9 : vector<1x256xf32> to vector<8x256xf32>
    %63 = arith.addf %61, %62 : vector<8x256xf32>
    %64 = vector.extract_strided_slice %63 {offsets = [0, 0], sizes = [8, 128], strides = [1, 1]} : vector<8x256xf32> to vector<8x128xf32>
    %65 = vector.extract_strided_slice %63 {offsets = [0, 128], sizes = [8, 128], strides = [1, 1]} : vector<8x256xf32> to vector<8x128xf32>
    %cst_32 = arith.constant 0.176776692 : f32
    %66 = vector.broadcast %cst_32 : f32 to vector<8x128xf32>
    %67 = arith.mulf %59, %66 : vector<8x128xf32>
    %68 = arith.truncf %67 : vector<8x128xf32> to vector<8x128xbf16>
    %69 = arith.truncf %64 : vector<8x128xf32> to vector<8x128xbf16>
    %70 = arith.truncf %65 : vector<8x128xf32> to vector<8x128xbf16>
    %cst_33 = arith.constant 0.000000e+00 : f32
    %71 = vector.broadcast %cst_33 : f32 to vector<8x128xf32>
    %72 = vector.extract_strided_slice %68 {offsets = [0, 0], sizes = [8, 32], strides = [1, 1]} : vector<8x128xbf16> to vector<8x32xbf16>
    %73 = vector.extract_strided_slice %69 {offsets = [0, 0], sizes = [8, 32], strides = [1, 1]} : vector<8x128xbf16> to vector<8x32xbf16>
    %cst_34 = arith.constant dense<0.000000e+00> : vector<8x8xf32>
    %74 = tpu.matmul %72, %73, %cst_34 {dimension_numbers = #tpu.dot_dimension_numbers<[1], [1], [0], [0], [0, 0, 1, 0], [], []>} : vector<8x32xbf16>, vector<8x32xbf16>, vector<8x8xf32> -> vector<8x8xf32>
    %cst_35 = arith.constant dense<0xFF800000> : vector<8xf32>
    %75 = vector.multi_reduction <maximumf>, %74, %cst_35 [1] : vector<8x8xf32> to vector<8xf32>
    %76 = vector.shape_cast %75 : vector<8xf32> to vector<8x1xf32>
    %77 = vector.broadcast %76 : vector<8x1xf32> to vector<8x8xf32>
    %78 = arith.subf %74, %77 : vector<8x8xf32>
    %79 = math.exp %78 : vector<8x8xf32>
    %cst_36 = arith.constant dense<0.000000e+00> : vector<8xf32>
    %80 = vector.multi_reduction <add>, %79, %cst_36 [1] : vector<8x8xf32> to vector<8xf32>
    %81 = vector.shape_cast %80 : vector<8xf32> to vector<8x1xf32>
    %82 = vector.broadcast %81 : vector<8x1xf32> to vector<8x8xf32>
    %83 = arith.divf %79, %82 : vector<8x8xf32>
    %84 = arith.truncf %83 : vector<8x8xf32> to vector<8x8xbf16>
    %85 = vector.extract_strided_slice %70 {offsets = [0, 0], sizes = [8, 32], strides = [1, 1]} : vector<8x128xbf16> to vector<8x32xbf16>
    %cst_37 = arith.constant dense<0.000000e+00> : vector<8x32xf32>
    %86 = tpu.matmul %84, %85, %cst_37 {dimension_numbers = #tpu.dot_dimension_numbers<[1], [0], [0], [1], [0, 0, 1, 1], [], []>} : vector<8x8xbf16>, vector<8x32xbf16>, vector<8x32xf32> -> vector<8x32xf32>
    %87 = arith.truncf %86 : vector<8x32xf32> to vector<8x32xbf16>
    %88 = vector.extract_strided_slice %10 {offsets = [0, 0], sizes = [32, 128], strides = [1, 1]} : vector<128x128xbf16> to vector<32x128xbf16>
    %cst_38 = arith.constant dense<0.000000e+00> : vector<8x128xf32>
    %89 = tpu.matmul %87, %88, %cst_38 {dimension_numbers = #tpu.dot_dimension_numbers<[1], [0], [0], [1], [0, 0, 1, 1], [], []>} : vector<8x32xbf16>, vector<32x128xbf16>, vector<8x128xf32> -> vector<8x128xf32>
    %90 = arith.addf %71, %89 : vector<8x128xf32>
    %91 = vector.extract_strided_slice %68 {offsets = [0, 32], sizes = [8, 32], strides = [1, 1]} : vector<8x128xbf16> to vector<8x32xbf16>
    %92 = vector.extract_strided_slice %69 {offsets = [0, 32], sizes = [8, 32], strides = [1, 1]} : vector<8x128xbf16> to vector<8x32xbf16>
    %cst_39 = arith.constant dense<0.000000e+00> : vector<8x8xf32>
    %93 = tpu.matmul %91, %92, %cst_39 {dimension_numbers = #tpu.dot_dimension_numbers<[1], [1], [0], [0], [0, 0, 1, 0], [], []>} : vector<8x32xbf16>, vector<8x32xbf16>, vector<8x8xf32> -> vector<8x8xf32>
    %cst_40 = arith.constant dense<0xFF800000> : vector<8xf32>
    %94 = vector.multi_reduction <maximumf>, %93, %cst_40 [1] : vector<8x8xf32> to vector<8xf32>
    %95 = vector.shape_cast %94 : vector<8xf32> to vector<8x1xf32>
    %96 = vector.broadcast %95 : vector<8x1xf32> to vector<8x8xf32>
    %97 = arith.subf %93, %96 : vector<8x8xf32>
    %98 = math.exp %97 : vector<8x8xf32>
    %cst_41 = arith.constant dense<0.000000e+00> : vector<8xf32>
    %99 = vector.multi_reduction <add>, %98, %cst_41 [1] : vector<8x8xf32> to vector<8xf32>
    %100 = vector.shape_cast %99 : vector<8xf32> to vector<8x1xf32>
    %101 = vector.broadcast %100 : vector<8x1xf32> to vector<8x8xf32>
    %102 = arith.divf %98, %101 : vector<8x8xf32>
    %103 = arith.truncf %102 : vector<8x8xf32> to vector<8x8xbf16>
    %104 = vector.extract_strided_slice %70 {offsets = [0, 32], sizes = [8, 32], strides = [1, 1]} : vector<8x128xbf16> to vector<8x32xbf16>
    %cst_42 = arith.constant dense<0.000000e+00> : vector<8x32xf32>
    %105 = tpu.matmul %103, %104, %cst_42 {dimension_numbers = #tpu.dot_dimension_numbers<[1], [0], [0], [1], [0, 0, 1, 1], [], []>} : vector<8x8xbf16>, vector<8x32xbf16>, vector<8x32xf32> -> vector<8x32xf32>
    %106 = arith.truncf %105 : vector<8x32xf32> to vector<8x32xbf16>
    %107 = vector.extract_strided_slice %10 {offsets = [32, 0], sizes = [32, 128], strides = [1, 1]} : vector<128x128xbf16> to vector<32x128xbf16>
    %cst_43 = arith.constant dense<0.000000e+00> : vector<8x128xf32>
    %108 = tpu.matmul %106, %107, %cst_43 {dimension_numbers = #tpu.dot_dimension_numbers<[1], [0], [0], [1], [0, 0, 1, 1], [], []>} : vector<8x32xbf16>, vector<32x128xbf16>, vector<8x128xf32> -> vector<8x128xf32>
    %109 = arith.addf %90, %108 : vector<8x128xf32>
    %110 = vector.extract_strided_slice %68 {offsets = [0, 64], sizes = [8, 32], strides = [1, 1]} : vector<8x128xbf16> to vector<8x32xbf16>
    %111 = vector.extract_strided_slice %69 {offsets = [0, 64], sizes = [8, 32], strides = [1, 1]} : vector<8x128xbf16> to vector<8x32xbf16>
    %cst_44 = arith.constant dense<0.000000e+00> : vector<8x8xf32>
    %112 = tpu.matmul %110, %111, %cst_44 {dimension_numbers = #tpu.dot_dimension_numbers<[1], [1], [0], [0], [0, 0, 1, 0], [], []>} : vector<8x32xbf16>, vector<8x32xbf16>, vector<8x8xf32> -> vector<8x8xf32>
    %cst_45 = arith.constant dense<0xFF800000> : vector<8xf32>
    %113 = vector.multi_reduction <maximumf>, %112, %cst_45 [1] : vector<8x8xf32> to vector<8xf32>
    %114 = vector.shape_cast %113 : vector<8xf32> to vector<8x1xf32>
    %115 = vector.broadcast %114 : vector<8x1xf32> to vector<8x8xf32>
    %116 = arith.subf %112, %115 : vector<8x8xf32>
    %117 = math.exp %116 : vector<8x8xf32>
    %cst_46 = arith.constant dense<0.000000e+00> : vector<8xf32>
    %118 = vector.multi_reduction <add>, %117, %cst_46 [1] : vector<8x8xf32> to vector<8xf32>
    %119 = vector.shape_cast %118 : vector<8xf32> to vector<8x1xf32>
    %120 = vector.broadcast %119 : vector<8x1xf32> to vector<8x8xf32>
    %121 = arith.divf %117, %120 : vector<8x8xf32>
    %122 = arith.truncf %121 : vector<8x8xf32> to vector<8x8xbf16>
    %123 = vector.extract_strided_slice %70 {offsets = [0, 64], sizes = [8, 32], strides = [1, 1]} : vector<8x128xbf16> to vector<8x32xbf16>
    %cst_47 = arith.constant dense<0.000000e+00> : vector<8x32xf32>
    %124 = tpu.matmul %122, %123, %cst_47 {dimension_numbers = #tpu.dot_dimension_numbers<[1], [0], [0], [1], [0, 0, 1, 1], [], []>} : vector<8x8xbf16>, vector<8x32xbf16>, vector<8x32xf32> -> vector<8x32xf32>
    %125 = arith.truncf %124 : vector<8x32xf32> to vector<8x32xbf16>
    %126 = vector.extract_strided_slice %10 {offsets = [64, 0], sizes = [32, 128], strides = [1, 1]} : vector<128x128xbf16> to vector<32x128xbf16>
    %cst_48 = arith.constant dense<0.000000e+00> : vector<8x128xf32>
    %127 = tpu.matmul %125, %126, %cst_48 {dimension_numbers = #tpu.dot_dimension_numbers<[1], [0], [0], [1], [0, 0, 1, 1], [], []>} : vector<8x32xbf16>, vector<32x128xbf16>, vector<8x128xf32> -> vector<8x128xf32>
    %128 = arith.addf %109, %127 : vector<8x128xf32>
    %129 = vector.extract_strided_slice %68 {offsets = [0, 96], sizes = [8, 32], strides = [1, 1]} : vector<8x128xbf16> to vector<8x32xbf16>
    %130 = vector.extract_strided_slice %69 {offsets = [0, 96], sizes = [8, 32], strides = [1, 1]} : vector<8x128xbf16> to vector<8x32xbf16>
    %cst_49 = arith.constant dense<0.000000e+00> : vector<8x8xf32>
    %131 = tpu.matmul %129, %130, %cst_49 {dimension_numbers = #tpu.dot_dimension_numbers<[1], [1], [0], [0], [0, 0, 1, 0], [], []>} : vector<8x32xbf16>, vector<8x32xbf16>, vector<8x8xf32> -> vector<8x8xf32>
    %cst_50 = arith.constant dense<0xFF800000> : vector<8xf32>
    %132 = vector.multi_reduction <maximumf>, %131, %cst_50 [1] : vector<8x8xf32> to vector<8xf32>
    %133 = vector.shape_cast %132 : vector<8xf32> to vector<8x1xf32>
    %134 = vector.broadcast %133 : vector<8x1xf32> to vector<8x8xf32>
    %135 = arith.subf %131, %134 : vector<8x8xf32>
    %136 = math.exp %135 : vector<8x8xf32>
    %cst_51 = arith.constant dense<0.000000e+00> : vector<8xf32>
    %137 = vector.multi_reduction <add>, %136, %cst_51 [1] : vector<8x8xf32> to vector<8xf32>
    %138 = vector.shape_cast %137 : vector<8xf32> to vector<8x1xf32>
    %139 = vector.broadcast %138 : vector<8x1xf32> to vector<8x8xf32>
    %140 = arith.divf %136, %139 : vector<8x8xf32>
    %141 = arith.truncf %140 : vector<8x8xf32> to vector<8x8xbf16>
    %142 = vector.extract_strided_slice %70 {offsets = [0, 96], sizes = [8, 32], strides = [1, 1]} : vector<8x128xbf16> to vector<8x32xbf16>
    %cst_52 = arith.constant dense<0.000000e+00> : vector<8x32xf32>
    %143 = tpu.matmul %141, %142, %cst_52 {dimension_numbers = #tpu.dot_dimension_numbers<[1], [0], [0], [1], [0, 0, 1, 1], [], []>} : vector<8x8xbf16>, vector<8x32xbf16>, vector<8x32xf32> -> vector<8x32xf32>
    %144 = arith.truncf %143 : vector<8x32xf32> to vector<8x32xbf16>
    %145 = vector.extract_strided_slice %10 {offsets = [96, 0], sizes = [32, 128], strides = [1, 1]} : vector<128x128xbf16> to vector<32x128xbf16>
    %cst_53 = arith.constant dense<0.000000e+00> : vector<8x128xf32>
    %146 = tpu.matmul %144, %145, %cst_53 {dimension_numbers = #tpu.dot_dimension_numbers<[1], [0], [0], [1], [0, 0, 1, 1], [], []>} : vector<8x32xbf16>, vector<32x128xbf16>, vector<8x128xf32> -> vector<8x128xf32>
    %147 = arith.addf %128, %146 : vector<8x128xf32>
    %148 = vector.broadcast %11 : vector<1x128xf32> to vector<8x128xf32>
    %149 = arith.addf %147, %148 : vector<8x128xf32>
    %150 = arith.addf %1, %149 : vector<8x128xf32>
    %c0_54 = arith.constant 0 : index
    %c0_55 = arith.constant 0 : index
    %151 = vector.load %arg11[%c0_54, %c0_55] : memref<1x128xf32, #tpu.memory_space<vmem>>, vector<1x128xf32>
    %c0_56 = arith.constant 0 : index
    %c0_57 = arith.constant 0 : index
    %152 = vector.load %arg12[%c0_56, %c0_57] : memref<1x128xf32, #tpu.memory_space<vmem>>, vector<1x128xf32>
    %c0_58 = arith.constant 0 : index
    %c0_59 = arith.constant 0 : index
    %153 = vector.load %arg13[%c0_58, %c0_59] : memref<128x256xbf16, #tpu.memory_space<vmem>>, vector<128x256xbf16>
    %c0_60 = arith.constant 0 : index
    %c0_61 = arith.constant 0 : index
    %154 = vector.load %arg14[%c0_60, %c0_61] : memref<1x256xf32, #tpu.memory_space<vmem>>, vector<1x256xf32>
    %c0_62 = arith.constant 0 : index
    %c0_63 = arith.constant 0 : index
    %155 = vector.load %arg15[%c0_62, %c0_63] : memref<256x128xbf16, #tpu.memory_space<vmem>>, vector<256x128xbf16>
    %c0_64 = arith.constant 0 : index
    %c0_65 = arith.constant 0 : index
    %156 = vector.load %arg16[%c0_64, %c0_65] : memref<1x128xf32, #tpu.memory_space<vmem>>, vector<1x128xf32>
    %cst_66 = arith.constant dense<0.000000e+00> : vector<8xf32>
    %157 = vector.multi_reduction <add>, %150, %cst_66 [1] : vector<8x128xf32> to vector<8xf32>
    %158 = vector.shape_cast %157 : vector<8xf32> to vector<8x1xf32>
    %cst_67 = arith.constant 1.280000e+02 : f32
    %159 = vector.broadcast %cst_67 : f32 to vector<8x1xf32>
    %160 = arith.divf %158, %159 : vector<8x1xf32>
    %161 = vector.broadcast %160 : vector<8x1xf32> to vector<8x128xf32>
    %162 = arith.subf %150, %161 : vector<8x128xf32>
    %163 = arith.mulf %162, %162 : vector<8x128xf32>
    %cst_68 = arith.constant dense<0.000000e+00> : vector<8xf32>
    %164 = vector.multi_reduction <add>, %163, %cst_68 [1] : vector<8x128xf32> to vector<8xf32>
    %165 = vector.shape_cast %164 : vector<8xf32> to vector<8x1xf32>
    %cst_69 = arith.constant 1.280000e+02 : f32
    %166 = vector.broadcast %cst_69 : f32 to vector<8x1xf32>
    %167 = arith.divf %165, %166 : vector<8x1xf32>
    %168 = vector.broadcast %160 : vector<8x1xf32> to vector<8x128xf32>
    %169 = arith.subf %150, %168 : vector<8x128xf32>
    %cst_70 = arith.constant 9.99999974E-6 : f32
    %170 = vector.broadcast %cst_70 : f32 to vector<8x1xf32>
    %171 = arith.addf %167, %170 : vector<8x1xf32>
    %172 = math.rsqrt %171 : vector<8x1xf32>
    %173 = vector.broadcast %172 : vector<8x1xf32> to vector<8x128xf32>
    %174 = arith.mulf %169, %173 : vector<8x128xf32>
    %175 = vector.broadcast %151 : vector<1x128xf32> to vector<8x128xf32>
    %176 = arith.mulf %174, %175 : vector<8x128xf32>
    %177 = vector.broadcast %152 : vector<1x128xf32> to vector<8x128xf32>
    %178 = arith.addf %176, %177 : vector<8x128xf32>
    %179 = arith.truncf %178 : vector<8x128xf32> to vector<8x128xbf16>
    %cst_71 = arith.constant dense<0.000000e+00> : vector<8x256xf32>
    %180 = tpu.matmul %179, %153, %cst_71 {dimension_numbers = #tpu.dot_dimension_numbers<[1], [0], [0], [1], [0, 0, 1, 1], [], []>} : vector<8x128xbf16>, vector<128x256xbf16>, vector<8x256xf32> -> vector<8x256xf32>
    %181 = vector.broadcast %154 : vector<1x256xf32> to vector<8x256xf32>
    %182 = arith.addf %180, %181 : vector<8x256xf32>
    %cst_72 = arith.constant 5.000000e-01 : f32
    %183 = vector.broadcast %cst_72 : f32 to vector<8x256xf32>
    %184 = arith.mulf %183, %182 : vector<8x256xf32>
    %cst_73 = arith.constant 0.707106769 : f32
    %185 = vector.broadcast %cst_73 : f32 to vector<8x256xf32>
    %186 = arith.mulf %182, %185 : vector<8x256xf32>
    %187 = math.erf %186 : vector<8x256xf32>
    %cst_74 = arith.constant 1.000000e+00 : f32
    %188 = vector.broadcast %cst_74 : f32 to vector<8x256xf32>
    %189 = arith.addf %188, %187 : vector<8x256xf32>
    %190 = arith.mulf %184, %189 : vector<8x256xf32>
    %191 = arith.truncf %190 : vector<8x256xf32> to vector<8x256xbf16>
    %cst_75 = arith.constant dense<0.000000e+00> : vector<8x128xf32>
    %192 = tpu.matmul %191, %155, %cst_75 {dimension_numbers = #tpu.dot_dimension_numbers<[1], [0], [0], [1], [0, 0, 1, 1], [], []>} : vector<8x256xbf16>, vector<256x128xbf16>, vector<8x128xf32> -> vector<8x128xf32>
    %193 = arith.addf %150, %192 : vector<8x128xf32>
    %194 = vector.broadcast %156 : vector<1x128xf32> to vector<8x128xf32>
    %195 = arith.addf %193, %194 : vector<8x128xf32>
    %c0_76 = arith.constant 0 : index
    %c0_77 = arith.constant 0 : index
    %c0_78 = arith.constant 0 : index
    %196 = vector.load %arg17[%c0_76, %c0_77, %c0_78] : memref<1x8x128xf32, #tpu.memory_space<vmem>>, vector<1x8x128xf32>
    %197 = vector.shape_cast %196 : vector<1x8x128xf32> to vector<8x128xf32>
    %198 = vector.shape_cast %195 : vector<8x128xf32> to vector<1x8x128xf32>
    tpu.vector_store %arg17[%c0_76, %c0_77, %c0_78], %198 {strides = array<i32>} : memref<1x8x128xf32, #tpu.memory_space<vmem>>, vector<1x8x128xf32>,
    return
  }
  func.func @transform_0(%arg0: i32) -> (i32, i32, i32) {
    %c0_i32 = arith.constant 0 : i32
    %c0_i32_0 = arith.constant 0 : i32
    %c0_i32_1 = arith.constant 0 : i32
    return %arg0, %c0_i32, %c0_i32_0 : i32, i32, i32
  }
  func.func @transform_1(%arg0: i32) -> (i32, i32, i32) {
    %c0_i32 = arith.constant 0 : i32
    %c0_i32_0 = arith.constant 0 : i32
    %c0_i32_1 = arith.constant 0 : i32
    return %arg0, %c0_i32, %c0_i32_0 : i32, i32, i32
  }
  func.func @transform_2(%arg0: i32) -> (i32, i32) {
    %c0_i32 = arith.constant 0 : i32
    %c0_i32_0 = arith.constant 0 : i32
    %c0_i32_1 = arith.constant 0 : i32
    return %c0_i32, %c0_i32_0 : i32, i32
  }
  func.func @transform_3(%arg0: i32) -> (i32, i32) {
    %c0_i32 = arith.constant 0 : i32
    %c0_i32_0 = arith.constant 0 : i32
    %c0_i32_1 = arith.constant 0 : i32
    return %c0_i32, %c0_i32_0 : i32, i32
  }
  func.func @transform_4(%arg0: i32) -> (i32, i32) {
    %c0_i32 = arith.constant 0 : i32
    %c0_i32_0 = arith.constant 0 : i32
    %c0_i32_1 = arith.constant 0 : i32
    return %c0_i32, %c0_i32_0 : i32, i32
  }
  func.func @transform_5(%arg0: i32) -> (i32, i32) {
    %c0_i32 = arith.constant 0 : i32
    %c0_i32_0 = arith.constant 0 : i32
    %c0_i32_1 = arith.constant 0 : i32
    return %c0_i32, %c0_i32_0 : i32, i32
  }
  func.func @transform_6(%arg0: i32) -> (i32, i32) {
    %c0_i32 = arith.constant 0 : i32
    %c0_i32_0 = arith.constant 0 : i32
    %c0_i32_1 = arith.constant 0 : i32
    return %c0_i32, %c0_i32_0 : i32, i32
  }
  func.func @transform_7(%arg0: i32) -> (i32, i32) {
    %c0_i32 = arith.constant 0 : i32
    %c0_i32_0 = arith.constant 0 : i32
    %c0_i32_1 = arith.constant 0 : i32
    return %c0_i32, %c0_i32_0 : i32, i32
  }
  func.func @transform_8(%arg0: i32) -> (i32, i32) {
    %c0_i32 = arith.constant 0 : i32
    %c0_i32_0 = arith.constant 0 : i32
    %c0_i32_1 = arith.constant 0 : i32
    return %c0_i32, %c0_i32_0 : i32, i32
  }
  func.func @transform_9(%arg0: i32) -> (i32, i32) {
    %c0_i32 = arith.constant 0 : i32
    %c0_i32_0 = arith.constant 0 : i32
    %c0_i32_1 = arith.constant 0 : i32
    return %c0_i32, %c0_i32_0 : i32, i32
  }
  func.func @transform_10(%arg0: i32) -> (i32, i32) {
    %c0_i32 = arith.constant 0 : i32
    %c0_i32_0 = arith.constant 0 : i32
    %c0_i32_1 = arith.constant 0 : i32
    return %c0_i32, %c0_i32_0 : i32, i32
  }
  func.func @transform_11(%arg0: i32) -> (i32, i32) {
    %c0_i32 = arith.constant 0 : i32
    %c0_i32_0 = arith.constant 0 : i32
    %c0_i32_1 = arith.constant 0 : i32
    return %c0_i32, %c0_i32_0 : i32, i32
  }
  func.func @transform_12(%arg0: i32) -> (i32, i32) {
    %c0_i32 = arith.constant 0 : i32
    %c0_i32_0 = arith.constant 0 : i32
    %c0_i32_1 = arith.constant 0 : i32
    return %c0_i32, %c0_i32_0 : i32, i32
  }
  func.func @transform_13(%arg0: i32) -> (i32, i32) {
    %c0_i32 = arith.constant 0 : i32
    %c0_i32_0 = arith.constant 0 : i32
    %c0_i32_1 = arith.constant 0 : i32
    return %c0_i32, %c0_i32_0 : i32, i32
  }
  func.func @transform_14(%arg0: i32) -> (i32, i32) {
    %c0_i32 = arith.constant 0 : i32
    %c0_i32_0 = arith.constant 0 : i32
    %c0_i32_1 = arith.constant 0 : i32
    return %c0_i32, %c0_i32_0 : i32, i32
  }
  func.func @transform_15(%arg0: i32) -> (i32, i32) {
    %c0_i32 = arith.constant 0 : i32
    %c0_i32_0 = arith.constant 0 : i32
    %c0_i32_1 = arith.constant 0 : i32
    return %c0_i32, %c0_i32_0 : i32, i32
  }
  func.func @transform_16(%arg0: i32) -> (i32, i32, i32) {
    %c0_i32 = arith.constant 0 : i32
    %c0_i32_0 = arith.constant 0 : i32
    %c0_i32_1 = arith.constant 0 : i32
    return %arg0, %c0_i32, %c0_i32_0 : i32, i32, i32
  }
}

</mosaic_0001>

<bundles_post_ra>
// kernel: multiscale_apply.7
= control target key start
LH: loop header
LB: loop body
LE: loop exit
PB: predicated region body
PF: predicated region fallthrough
CT: control target
= control target key end

     0   :  { %s2438_s21 = smov 0   ;;  %s2824_s0 = inlined_call_operand.vmem [shape: f32[2,8,128], index: 0, kind: input, shape index: {}]   ;;  %s2825_s1 = inlined_call_operand.vmem [shape: f32[2,8,128], index: 1, kind: input, shape index: {}]   ;;  %s2826_s2 = inlined_call_operand.vmem [shape: f32[1,128], index: 2, kind: input, shape index: {}]   ;;  %s2827_s3 = inlined_call_operand.vmem [shape: f32[1,128], index: 3, kind: input, shape index: {}]   ;;  %s2828_s4 = inlined_call_operand.vmem [shape: bf16[128,128], index: 4, kind: input, shape index: {}]   ;;  %s2829_s5 = inlined_call_operand.vmem [shape: f32[1,128], index: 5, kind: input, shape index: {}]   ;;  %s2830_s6 = inlined_call_operand.vmem [shape: bf16[128,256], index: 6, kind: input, shape index: {}]   ;;  %s2831_s7 = inlined_call_operand.vmem [shape: f32[1,256], index: 7, kind: input, shape index: {}]   ;;  %s2832_s8 = inlined_call_operand.vmem [shape: bf16[128,128], index: 8, kind: input, shape index: {}]   ;;  %s2833_s9 = inlined_call_operand.vmem [shape: f32[1,128], index: 9, kind: input, shape index: {}]   ;;  %s2834_s10 = inlined_call_operand.vmem [shape: f32[1,128], index: 10, kind: input, shape index: {}]   ;;  %s2835_s11 = inlined_call_operand.vmem [shape: f32[1,128], index: 11, kind: input, shape index: {}]   ;;  %s2836_s12 = inlined_call_operand.vmem [shape: bf16[128,256], index: 12, kind: input, shape index: {}]   ;;  %s2837_s13 = inlined_call_operand.vmem [shape: f32[1,256], index: 13, kind: input, shape index: {}]   ;;  %s2838_s14 = inlined_call_operand.vmem [shape: bf16[256,128], index: 14, kind: input, shape index: {}]   ;;  %s2839_s15 = inlined_call_operand.vmem [shape: f32[1,128], index: 15, kind: input, shape index: {}]   ;;  %s2840_s16 = inlined_call_operand.vmem [shape: f32[2,8,128], index: 16, kind: output, shape index: {}]  }
   0x1   :  { %2841 = sst [smem:[#allocation2_spill]] %s2824_s0 }
   0x2 LB: > { %s1967_s22 = sadd.s32 4294967295, %s2345_s21   ;;  %p1971_p0 = scmp.ge.s32.totalorder %s2345_s21, 1  ;;  %s2345_s21 = sphi %s2438_s21, %s26_s21  }
   0x3   : > { %p470_p1 = scmp.lt.s32.totalorder %s2345_s21, 3 }
   0x5   : > { %p471_p2 = pnand %p1971_p0, %p470_p1 }
   0x6   : > { %p522_p3 = scmp.lt.s32.totalorder (!%p471_p2), %s1967_s22, 1  ;;  %s2842_s29 = sld [smem:[#allocation2_spill]] (!%p471_p2)  ;;  %v2233_v2 = vld [vmem:[%s2830_s6 + $0x4] ss:$8 sps:$4 sm:$0xff] (!%p471_p2)   ;;  %v2235_v3 = vld [vmem:[%s2830_s6] ss:$8 sps:$4 sm:$0xff] (!%p471_p2)   ;;  %v726_v54 = vlaneseq (!%p471_p2) }
   0x7   : > { %474 = sbr.rel (%p471_p2) target bundleno = 3684 (0xe64), region = 84  ;;  %v2238_v4 = vld [vmem:[%s2828_s4] sm:$0xff] (!%p471_p2)   ;;  %v2347_v5 = vmov (!%p471_p2), 0.0   ;;  %v2236_v6 = vld [vmem:[%s2830_s6 + $0x14] ss:$8 sps:$4 sm:$0xff] (!%p471_p2)   ;;  %816 = vmatprep.subr.bf16.mxu1 (!%p471_p2), %v2233_v2  ;;  %v2242_v17 = vld [vmem:[%s2828_s4 + $0x8] sm:$0xff] (!%p471_p2)  }
   0x8   : > { %2119 = vmatprep.subr.bf16.mxu0 (!%p471_p2), %v2347_v5  ;;  %817 = vmatpush1.bf16.msra.mxu1 (!%p471_p2), %v2235_v3  ;;  %v2239_v7 = vld [vmem:[%s2830_s6 + $0x10] ss:$8 sps:$4 sm:$0xff] (!%p471_p2)   ;;  %v2240_v8 = vld [vmem:[%s2830_s6 + $0x24] ss:$8 sps:$4 sm:$0xff] (!%p471_p2)   ;;  %v2243_v18 = vld [vmem:[%s2830_s6 + $0x20] ss:$8 sps:$4 sm:$0xff] (!%p471_p2)  }
   0x9   : > { %2120 = vmatpush3.bf16.msra.mxu0 (!%p471_p2), %v2238_v4  ;;  %818 = vmatprep.subr.bf16.mxu1 (!%p471_p2), %v2236_v6  ;;  %v2244_v19 = vld [vmem:[%s2830_s6 + $0x34] ss:$8 sps:$4 sm:$0xff] (!%p471_p2)   ;;  %v2247_v21 = vld [vmem:[%s2830_s6 + $0x30] ss:$8 sps:$4 sm:$0xff] (!%p471_p2)   ;;  %v2248_v22 = vld [vmem:[%s2830_s6 + $0x44] ss:$8 sps:$4 sm:$0xff] (!%p471_p2)  }
   0xa   : > { %2121 = vmatprep.subr.bf16.mxu0 (!%p471_p2), %v2347_v5  ;;  %v2246_v20 = vld [vmem:[%s2828_s4 + $0x10] sm:$0xff] (!%p471_p2)   ;;  %v2250_v23 = vld [vmem:[%s2828_s4 + $0x18] sm:$0xff] (!%p471_p2)   ;;  %v2251_v24 = vld [vmem:[%s2830_s6 + $0x40] ss:$8 sps:$4 sm:$0xff] (!%p471_p2)   ;;  %v2348_v29 = vmov (!%p471_p2), 0   ;;  %vm2349_vm0 = vmmov (!%p471_p2), 0  }
   0xb   : > { %v2252_v25 = vld [vmem:[%s2830_s6 + $0x54] ss:$8 sps:$4 sm:$0xff] (!%p471_p2)   ;;  %v2254_v26 = vld [vmem:[%s2828_s4 + $0x20] sm:$0xff] (!%p471_p2)   ;;  %v2255_v27 = vld [vmem:[%s2830_s6 + $0x50] ss:$8 sps:$4 sm:$0xff] (!%p471_p2)   ;;  %848 = vmatprep.mubr.bf16.mxu1 (!%p471_p2), %v2348_v29  ;;  %2135 = vmatprep.mubr.msk.bf16.mxu0 (!%p471_p2), %vm2349_vm0, %v2347_v5  ;;  %v2565_v55 = vshrl.u32 (!%p471_p2), %v726_v54, 7 }
   0xc   : > { %819 = vmatpush1.bf16.msra.mxu1 (!%p471_p2), %v2239_v7  ;;  %v2256_v28 = vld [vmem:[%s2830_s6 + $0x64] ss:$8 sps:$4 sm:$0xff] (!%p471_p2)   ;;  %v2259_v31 = vld [vmem:[%s2830_s6 + $0x60] ss:$8 sps:$4 sm:$0xff] (!%p471_p2)   ;;  %v2260_v32 = vld [vmem:[%s2830_s6 + $0x74] ss:$8 sps:$4 sm:$0xff] (!%p471_p2)  }
   0xd   : > { %820 = vmatprep.subr.bf16.mxu1 (!%p471_p2), %v2240_v8  ;;  %2122 = vmatpush3.bf16.msra.mxu0 (!%p471_p2), %v2242_v17  ;;  %v2258_v30 = vld [vmem:[%s2828_s4 + $0x28] sm:$0xff] (!%p471_p2)   ;;  %v2262_v33 = vld [vmem:[%s2828_s4 + $0x30] sm:$0xff] (!%p471_p2)   ;;  %v2264_v35 = vld [vmem:[%s2828_s4 + $0x38] sm:$0xff] (!%p471_p2)   ;;  %v728_v56 = vsub.s32 (!%p471_p2), 0, %v2565_v55  ;;  %v732_v58 = vsub.s32 (!%p471_p2), 1, %v2565_v55  ;;  %vm861_vm1 = vcmask (!%p471_p2), 261120  }
   0xe   : > { %s2844_s22 = smov (!%p522_p3, %s1967_s22), 1  ;;  %2123 = vmatprep.subr.bf16.mxu0 %v2347_v5  ;;  %v2263_v34 = vld [vmem:[%s2830_s6 + $0x70] ss:$8 sps:$4 sm:$0xff]   ;;  %v1975_v43 = vld [vmem:[%s2826_s2] ss:$0 sm:$0xff]  ;;  %vm924_vm2 = vcmask 1043456  }
   0xf   : > { %s2446_s23 = sshll.u32 %s2844_s22, 3  ;;  %v1976_v45 = vld [vmem:[%s2827_s3] ss:$0 sm:$0xff]  ;;  %s2350_s20 = smov 96   ;;  %vm908_vm3 = vcmask 64512   ;;  %v2266_v54 = vld [vmem:[%s2832_s8 + $0x8] sm:$0xff]  }
  0x10   : > { %s529_s26 = scalar_lea.vmem %s2825_s1, %s2446_s23  ;;  %s525_s30 = scalar_lea.vmem %s2842_s29, %s2446_s23  ;;  %821 = vmatpush1.bf16.msra.mxu1 %v2243_v18  ;;  %v572_v57 = vld [vmem:[%s2831_s7] sm:$0x3] }
  0x11   : > { %v536_v0 = vld [vmem:[%s529_s26] sm:$0xff]  ;;  %822 = vmatprep.subr.bf16.mxu1 %v2244_v19  ;;  %2124 = vmatpush3.bf16.msra.mxu0 %v2246_v20  ;;  %v729_v59 = vrot.slane %v572_v57, %v728_v56  ;;  %v733_v60 = vrot.slane %v572_v57, %v732_v58  ;;  %s2351_s22 = smov 64   ;;  %s2352_s17 = smov 32  }
  0x12   : > { %616 = vadd.xlane.f32.xlu0 %v536_v0  ;;  %v2456_v1 = vld [vmem:[%s525_s30] sm:$0xff]  ;;  %2125 = vmatprep.subr.bf16.mxu0 %v2347_v5  ;;  %s533_s26 = scalar_lea.vmem %s2840_s16, %s2446_s23 }
  0x13   : > { %v1977_v3 = vld [vmem:[%s2829_s5] ss:$0 sm:$0xff] }
  0x14   : > { %823 = vmatpush1.bf16.msra.mxu1 %v2247_v21 }
  0x15   : > { %824 = vmatprep.subr.bf16.mxu1 %v2248_v22  ;;  %2126 = vmatpush3.bf16.msra.mxu0 %v2250_v23 }
  0x16   : > { %590 = vadd.xlane.f32.xlu0 %v2456_v1  ;;  %2127 = vmatprep.subr.bf16.mxu0 %v2347_v5 }
  0x18   : > { %825 = vmatpush1.bf16.msra.mxu1 %v2251_v24 }
  0x19   : > { %826 = vmatprep.subr.bf16.mxu1 %v2252_v25  ;;  %2128 = vmatpush3.bf16.msra.mxu0 %v2254_v26 }
  0x1a   : > { %2129 = vmatprep.subr.bf16.mxu0 %v2347_v5 }
  0x1c   : > { %827 = vmatpush1.bf16.msra.mxu1 %v2255_v27 }
  0x1d   : > { %828 = vmatprep.subr.bf16.mxu1 %v2256_v28  ;;  %2130 = vmatpush3.bf16.msra.mxu0 %v2258_v30 }
  0x1e   : > { %2131 = vmatprep.subr.bf16.mxu0 %v2347_v5 }
  0x20   : > { %829 = vmatpush1.bf16.msra.mxu1 %v2259_v31 }
  0x21   : > { %830 = vmatprep.subr.bf16.mxu1 %v2260_v32  ;;  %2132 = vmatpush3.bf16.msra.mxu0 %v2262_v33 }
  0x22   : > { %2133 = vmatprep.subr.bf16.mxu0 %v2347_v5 }
  0x24   : > { %831 = vmatpush1.bf16.msra.mxu1 %v2263_v34 }
  0x25   : > { %2145 = vmatprep.subr.bf16.mxu1 %v2347_v5  ;;  %2134 = vmatpush3.bf16.msra.mxu0 %v2264_v35 }
  0x26   : > { %2139 = vmatprep.subr.bf16.mxu0 %v2347_v5 }
  0x9f   : > { %v617_v9 = vpop.xlane.xlu0 %616 }
  0xa0   : > { %v618_v10 = vmul.f32 0.0078125, %v617_v9 }
  0xa2   : > { %v2479_v11 = vsub.f32 %v536_v0, %v618_v10 }
  0xa3   : > { %v591_v12 = vpop.xlane.xlu0 %590 }
  0xa4   : > { %v593_v13 = vmul.f32 0.0078125, %v591_v12  ;;  %v620_v14 = vmul.f32 %v2479_v11, %v2479_v11 }
  0xa6   : > { %v2484_v15 = vsub.f32 %v2456_v1, %v593_v13  ;;  %621 = vadd.xlane.f32.xlu1 %v620_v14 }
  0xa8   : > { %v595_v16 = vmul.f32 %v2484_v15, %v2484_v15 }
  0xaa   : > { %596 = vadd.xlane.f32.xlu1 %v595_v16 }
 0x133   : > { %v622_v36 = vpop.xlane.xlu1 %621 }
 0x134   : > { %v623_v37 = vmul.f32 0.0078125, %v622_v36 }
 0x136   : > { %v624_v38 = vadd.f32 1e-05, %v623_v37 }
 0x137   : > { %v597_v39 = vpop.xlane.xlu1 %596 }
 0x138   : > { %2313 = vrsqrt.f32 %v624_v38  ;;  %v598_v40 = vmul.f32 0.0078125, %v597_v39 }
 0x13a   : > { %v599_v41 = vadd.f32 1e-05, %v598_v40 }
 0x13c   : > { %2315 = vrsqrt.f32 %v599_v41 }
 0x142   : > { %v2314_v42 = vpop.eup %2313 }
 0x143   : > { %v626_v44 = vmul.f32 %v2314_v42, %v2479_v11 }
 0x145   : > { %v627_v46 = vmul.f32 %v1975_v43, %v626_v44 }
 0x146   : > { %v2316_v47 = vpop.eup %2315 }
 0x147   : > { %v628_v48 = vadd.f32 %v1976_v45, %v627_v46  ;;  %v601_v49 = vmul.f32 %v2316_v47, %v2484_v15  ;;  %v2267_v47 = vld [vmem:[%s2832_s8 + $0x10] sm:$0xff]  }
 0x149   : > { %v724_v50 = vpack.c.bf16 %v628_v48, %v628_v48  ;;  %v608_v51 = vmul.f32 %v1975_v43, %v601_v49  ;;  %v2268_v48 = vld [vmem:[%s2832_s8 + $0x18] sm:$0xff]  }
 0x14b   : > { %849 = vmatmul.mubr.bf16.vlgmr.msra.gmra.mrb[0].mxu1 %v724_v50  ;;  %v615_v52 = vadd.f32 %v1976_v45, %v608_v51 }
 0x14c   : > { %2147 = vmatprep.mubr.msk.bf16.mxu1 %vm2349_vm0, %v2347_v5 }
 0x14d   : > { %v629_v53 = vpack.c.bf16 %v615_v52, %v615_v52  ;;  %v2265_v52 = vld [vmem:[%s2832_s8] sm:$0xff]  }
 0x14f   : > { %2136 = vmatmul.mubr.bf16.vlgmr.msra.gmra.mrb[0].mxu0 %v629_v53 }
 0x150   : > { %2141 = vmatprep.mubr.msk.bf16.mxu0 %vm2349_vm0, %v2347_v5 }
 0x21e   : > { %v850_v61 = vpop.f32.mrb[0].mxu1 }
 0x21f   : > { %v851_v62 = vadd.f32 %v850_v61, %v729_v59  ;;  %v852_v63 = vpop.f32.mrb[1].mxu1 }
 0x220   : > { %v853_v0 = vadd.f32 %v852_v63, %v733_v60  ;;  %v854_v2 = vpop.f32.mrb[2].mxu1 }
 0x221   : > { %v2579_v4 = vpack.c.bf16 %v851_v62, %v851_v62  ;;  %v855_v6 = vpop.f32.mrb[3].mxu1 }
 0x222   : > { %v2581_v7 = vpack.c.bf16 %v853_v0, %v853_v0  ;;  %v718_v8 = vpop.f32.mrb[0].mxu0 }
 0x223   : > { %v719_v9 = vadd.f32 %v1977_v3, %v718_v8  ;;  %973 = vrot.lane.b32.xlu0 %v2579_v4, %s2350_s20  ;;  %v2137_v10 = vpop.f32.mrb[1].mxu0  ;;  %v866_v11 = vsel %vm861_vm1, %v2579_v4, 0 }
 0x224   : > { %v721_v12 = vpop.f32.mrb[2].mxu0  ;;  %2140 = vmatpush3.bf16.xpose.msra.mxu0 %v866_v11  ;;  %v926_v13 = vsel %vm924_vm2, %v2581_v7, 0 }
 0x225   : > { %v857_v14 = vmul.f32 0.17677669, %v719_v9  ;;  %v2138_v15 = vpop.f32.mrb[3].mxu0  ;;  %2146 = vmatpush3.bf16.msra.mxu1 %v926_v13  ;;  %2151 = vmatprep.subr.bf16.mxu0 %v2347_v5 }
 0x226   : > { %2157 = vmatprep.subr.bf16.mxu1 %v2347_v5 }
 0x227   : > { %v2591_v16 = vpack.c.bf16 %v857_v14, %v857_v14 }
 0x229   : > { %970 = vrot.lane.b32.xlu1 %v2591_v16, %s2350_s20 }
 0x22b   : > { %2142 = vmatmul.mubr.msk.bf16.vlgmr.msra.gmra.mrb[4].mxu0 %vm861_vm1, %v2591_v16 }
 0x22c   : > { %2153 = vmatprep.mubr.msk.bf16.mxu0 %vm2349_vm0, %v2347_v5 }
 0x295   : > { %v974_v17 = vpop.permute.xlu0 %973 }
 0x296   : > { %v979_v18 = vsel %vm861_vm1, %v974_v17, 0 }
 0x297   : > { %2152 = vmatpush3.bf16.xpose.msra.mxu0 %v979_v18 }
 0x298   : > { %2163 = vmatprep.subr.bf16.mxu0 %v2347_v5 }
 0x29b   : > { %v971_v19 = vpop.permute.xlu1 %970 }
 0x29e   : > { %2154 = vmatmul.mubr.msk.bf16.vlgmr.msra.gmra.mrb[8].mxu0 %vm861_vm1, %v971_v19 }
 0x29f   : > { %2167 = vmatprep.mubr.msk.bf16.mxu0 %vm2349_vm0, %v2347_v5  ;;  %2164 = vmatpush3.bf16.msra.mxu0 %v2267_v47 }
 0x2a0   : > { %2165 = vmatprep.subr.bf16.mxu0 %v2347_v5 }
 0x2a3   : > { %2166 = vmatpush3.bf16.msra.mxu0 %v2268_v48 }
 0x2a4   : > { %2179 = vmatprep.subr.bf16.mxu0 %v2347_v5 }
 0x2fe   : > { %v902_v20 = vpop.f32.mrb[4].mxu0 }
 0x2ff   : > { %v2143_v21 = vpop.f32.mrb[5].mxu0  ;;  %v909_v22 = vsel %vm908_vm3, %v902_v20, -inf }
 0x300   : > { %910 = vmax.xlane.f32.xlu1 %v909_v22  ;;  %v905_v23 = vpop.f32.mrb[6].mxu0 }
 0x301   : > { %v2144_v24 = vpop.f32.mrb[7].mxu0 }
 0x371   : > { %v1015_v25 = vpop.f32.mrb[8].mxu0 }
 0x372   : > { %v2155_v26 = vpop.f32.mrb[9].mxu0  ;;  %v1021_v27 = vsel %vm908_vm3, %v1015_v25, -inf }
 0x373   : > { %1022 = vmax.xlane.f32.xlu0 %v1021_v27  ;;  %v1018_v28 = vpop.f32.mrb[10].mxu0 }
 0x374   : > { %v2156_v30 = vpop.f32.mrb[11].mxu0 }
 0x38d   : > { %v911_v31 = vpop.xlane.xlu1 %910 }
 0x38e   : > { %v912_v32 = vsub.f32 %v902_v20, %v911_v31 }
 0x390   : > { %v913_v33 = vmul.f32 1.442695, %v912_v32  ;;  %v2269_v32 = vld [vmem:[%s2832_s8 + $0x20] sm:$0xff]  }
 0x392   : > { %2317 = vpow2.f32 %v913_v33 }
 0x39c   : > { %v2318_v34 = vpop.eup %2317 }
 0x39d   : > { %v915_v35 = vsel %vm908_vm3, %v2318_v34, 0.0 }
 0x39e   : > { %916 = vadd.xlane.f32.xlu0 %v915_v35 }
 0x3b4   : > { %1034 = vrot.lane.b32.xlu0 %v2581_v7, %s2350_s20 }
 0x400   : > { %v1023_v36 = vpop.xlane.xlu0 %1022 }
 0x401   : > { %v1024_v37 = vsub.f32 %v1015_v25, %v1023_v36 }
 0x403   : > { %v1025_v38 = vmul.f32 1.442695, %v1024_v37 }
 0x405   : > { %2319 = vpow2.f32 %v1025_v38 }
 0x40f   : > { %v2320_v39 = vpop.eup %2319 }
 0x410   : > { %v1027_v40 = vsel %vm908_vm3, %v2320_v39, 0.0 }
 0x411   : > { %1028 = vadd.xlane.f32.xlu1 %v1027_v40  ;;  %v2270_v40 = vld [vmem:[%s2832_s8 + $0x28] sm:$0xff]  }
 0x422   : > { %1195 = vrot.lane.b32.xlu1 %v2579_v4, %s2351_s22 }
 0x426   : > { %1193 = vrot.lane.b32.xlu1 %v2591_v16, %s2351_s22 }
 0x42b   : > { %v917_v41 = vpop.xlane.xlu0 %916 }
 0x42c   : > { %2321 = vrcp.f32 %v917_v41 }
 0x42f   : > { %v1035_v44 = vpop.permute.xlu0 %1034 }
 0x430   : > { %v1040_v46 = vsel %vm924_vm2, %v1035_v44, 0 }
 0x436   : > { %v2322_v42 = vpop.eup %2321 }
 0x437   : > { %v919_v43 = vmul.f32 %v2322_v42, %v2318_v34 }
 0x439   : > { %v920_v45 = vpack.c.bf16 %v919_v43, %v919_v43 }
 0x43b   : > { %2148 = vmatmul.mubr.msk.bf16.vlgmr.msra.gmra.mrb[4].mxu1 %vm908_vm3, %v920_v45 }
 0x43c   : > { %2158 = vmatpush3.bf16.msra.mxu1 %v1040_v46  ;;  %2159 = vmatprep.mubr.msk.bf16.mxu1 %vm2349_vm0, %v2347_v5 }
 0x43d   : > { %2171 = vmatprep.subr.bf16.mxu1 %v2347_v5 }
 0x49e   : > { %v1029_v49 = vpop.xlane.xlu1 %1028 }
 0x49f   : > { %2323 = vrcp.f32 %v1029_v49 }
 0x4a2   : > { %v1196_v63 = vpop.permute.xlu1 %1195 }
 0x4a3   : > { %v1201_v8 = vsel %vm861_vm1, %v1196_v63, 0 }
 0x4a6   : > { %v1194_v10 = vpop.permute.xlu1 %1193 }
 0x4a9   : > { %v2324_v50 = vpop.eup %2323 }
 0x4aa   : > { %v1031_v51 = vmul.f32 %v2324_v50, %v2320_v39 }
 0x4ac   : > { %v1032_v53 = vpack.c.bf16 %v1031_v51, %v1031_v51 }
 0x4ae   : > { %2160 = vmatmul.mubr.msk.bf16.vlgmr.msra.gmra.mrb[8].mxu1 %vm908_vm3, %v1032_v53 }
 0x4af   : > { %2172 = vmatpush3.bf16.msra.mxu1 %v2265_v52  ;;  %2175 = vmatprep.mubr.msk.bf16.mxu1 %vm2349_vm0, %v2347_v5 }
 0x4b0   : > { %2173 = vmatprep.subr.bf16.mxu1 %v2347_v5 }
 0x4b3   : > { %2174 = vmatpush3.bf16.msra.mxu1 %v2266_v54 }
 0x4b4   : > { %2185 = vmatprep.subr.bf16.mxu1 %v2347_v5 }
 0x50e   : > { %v962_v57 = vpop.f32.mrb[4].mxu1 }
 0x50f   : > { %v968_v59 = vpack.c.bf16 %v962_v57, %v962_v57  ;;  %v2149_v60 = vpop.f32.mrb[5].mxu1 }
 0x510   : > { %v965_v61 = vpop.f32.mrb[6].mxu1 }
 0x511   : > { %v2150_v62 = vpop.f32.mrb[7].mxu1  ;;  %2176 = vmatmul.mubr.msk.bf16.vlgmr.msra.gmra.mrb[12].mxu1 %vm861_vm1, %v968_v59  ;;  %v2271_v61 = vld [vmem:[%s2832_s8 + $0x30] sm:$0xff]  }
 0x512   : > { %2187 = vmatprep.mubr.msk.bf16.mxu1 %vm2349_vm0, %v2347_v5 }
 0x581   : > { %v1076_v0 = vpop.f32.mrb[8].mxu1 }
 0x582   : > { %v1082_v2 = vpack.c.bf16 %v1076_v0, %v1076_v0  ;;  %v2161_v3 = vpop.f32.mrb[9].mxu1 }
 0x583   : > { %v1079_v6 = vpop.f32.mrb[10].mxu1 }
 0x584   : > { %v2162_v9 = vpop.f32.mrb[11].mxu1  ;;  %2168 = vmatmul.mubr.msk.bf16.vlgmr.msra.gmra.mrb[12].mxu0 %vm861_vm1, %v1082_v2 }
 0x585   : > { %2180 = vmatpush3.bf16.xpose.msra.mxu0 %v1201_v8  ;;  %2181 = vmatprep.mubr.msk.bf16.mxu0 %vm2349_vm0, %v2347_v5 }
 0x586   : > { %2191 = vmatprep.subr.bf16.mxu0 %v2347_v5 }
 0x58c   : > { %2182 = vmatmul.mubr.msk.bf16.vlgmr.msra.gmra.mrb[16].mxu0 %vm861_vm1, %v1194_v10  ;;  %v2272_v10 = vld [vmem:[%s2832_s8 + $0x38] sm:$0xff]  }
 0x58d   : > { %2195 = vmatprep.mubr.msk.bf16.mxu0 %vm2349_vm0, %v2347_v5  ;;  %2192 = vmatpush3.bf16.msra.mxu0 %v2269_v32 }
 0x58e   : > { %2193 = vmatprep.subr.bf16.mxu0 %v2347_v5 }
 0x591   : > { %2194 = vmatpush3.bf16.msra.mxu0 %v2270_v40  ;;  %v2294_v40 = vld [vmem:[%s2836_s12 + $0x70] ss:$8 sps:$4 sm:$0xff]  }
 0x592   : > { %2205 = vmatprep.subr.bf16.mxu0 %v2347_v5 }
 0x5e4   : > { %v1187_v11 = vpop.f32.mrb[12].mxu1 }
 0x5e5   : > { %v2177_v12 = vpop.f32.mrb[13].mxu1 }
 0x5e6   : > { %v1190_v13 = vpop.f32.mrb[14].mxu1 }
 0x5e7   : > { %v2178_v14 = vpop.f32.mrb[15].mxu1 }
 0x657   : > { %v1132_v15 = vpop.f32.mrb[12].mxu0 }
 0x658   : > { %v2649_v17 = vadd.f32 %v1187_v11, %v1132_v15  ;;  %v2169_v18 = vpop.f32.mrb[13].mxu0  ;;  %v2022_v15 = vld [vmem:[%s2833_s9] ss:$0 sm:$0xff] }
 0x659   : > { %v1135_v19 = vpop.f32.mrb[14].mxu0 }
 0x65a   : > { %v2170_v20 = vpop.f32.mrb[15].mxu0 }
 0x65f   : > { %v1237_v21 = vpop.f32.mrb[16].mxu0 }
 0x660   : > { %v2183_v22 = vpop.f32.mrb[17].mxu0  ;;  %v1243_v23 = vsel %vm908_vm3, %v1237_v21, -inf }
 0x661   : > { %1244 = vmax.xlane.f32.xlu1 %v1243_v23  ;;  %v1240_v24 = vpop.f32.mrb[18].mxu0  ;;  %v2273_v23 = vld [vmem:[%s2836_s12] ss:$8 sps:$4 sm:$0xff]  }
 0x662   : > { %v2184_v25 = vpop.f32.mrb[19].mxu0  ;;  %v2275_v24 = vld [vmem:[%s2836_s12 + $0x4] ss:$8 sps:$4 sm:$0xff]  }
 0x663   : > { %v2278_v25 = vld [vmem:[%s2836_s12 + $0x14] ss:$8 sps:$4 sm:$0xff]  }
 0x672   : > { %1362 = vrot.lane.b32.xlu1 %v2579_v4, %s2352_s17 }
 0x676   : > { %1360 = vrot.lane.b32.xlu1 %v2591_v16, %s2352_s17 }
 0x6ee   : > { %v1245_v26 = vpop.xlane.xlu1 %1244 }
 0x6ef   : > { %v1246_v27 = vsub.f32 %v1237_v21, %v1245_v26  ;;  %v2281_v26 = vld [vmem:[%s2836_s12 + $0x24] ss:$8 sps:$4 sm:$0xff]  }
 0x6f1   : > { %v1247_v28 = vmul.f32 1.442695, %v1246_v27  ;;  %v2279_v27 = vld [vmem:[%s2836_s12 + $0x20] ss:$8 sps:$4 sm:$0xff]  }
 0x6f2   : > { %v1363_v36 = vpop.permute.xlu1 %1362 }
 0x6f3   : > { %2325 = vpow2.f32 %v1247_v28  ;;  %v1368_v38 = vsel %vm861_vm1, %v1363_v36, 0  ;;  %v2288_v36 = vld [vmem:[%s2836_s12 + $0x50] ss:$8 sps:$4 sm:$0xff]  }
 0x6f6   : > { %v1361_v39 = vpop.permute.xlu1 %1360 }
 0x6fd   : > { %v2326_v30 = vpop.eup %2325 }
 0x6fe   : > { %v1249_v31 = vsel %vm908_vm3, %v2326_v30, 0.0 }
 0x6ff   : > { %1250 = vadd.xlane.f32.xlu0 %v1249_v31 }
 0x715   : > { %1255 = vrot.lane.b32.xlu0 %v2581_v7, %s2351_s22 }
 0x78c   : > { %v1251_v4 = vpop.xlane.xlu0 %1250 }
 0x78d   : > { %2327 = vrcp.f32 %v1251_v4  ;;  %v2284_v4 = vld [vmem:[%s2836_s12 + $0x34] ss:$8 sps:$4 sm:$0xff]  }
 0x790   : > { %v1256_v16 = vpop.permute.xlu0 %1255 }
 0x791   : > { %v1261_v33 = vsel %vm924_vm2, %v1256_v16, 0  ;;  %v2282_v16 = vld [vmem:[%s2836_s12 + $0x30] ss:$8 sps:$4 sm:$0xff]  }
 0x792   : > { %2186 = vmatpush3.bf16.msra.mxu1 %v1261_v33  ;;  %v2287_v33 = vld [vmem:[%s2836_s12 + $0x44] ss:$8 sps:$4 sm:$0xff]  }
 0x793   : > { %2199 = vmatprep.subr.bf16.mxu1 %v2347_v5 }
 0x797   : > { %v2328_v34 = vpop.eup %2327 }
 0x798   : > { %v1253_v35 = vmul.f32 %v2328_v34, %v2326_v30  ;;  %v2285_v34 = vld [vmem:[%s2836_s12 + $0x40] ss:$8 sps:$4 sm:$0xff]  }
 0x79a   : > { %v1254_v37 = vpack.c.bf16 %v1253_v35, %v1253_v35  ;;  %v2290_v35 = vld [vmem:[%s2836_s12 + $0x54] ss:$8 sps:$4 sm:$0xff]  }
 0x79c   : > { %2188 = vmatmul.mubr.msk.bf16.vlgmr.msra.gmra.mrb[16].mxu1 %vm908_vm3, %v1254_v37  ;;  %v2293_v37 = vld [vmem:[%s2836_s12 + $0x64] ss:$8 sps:$4 sm:$0xff]  }
 0x79d   : > { %2200 = vmatpush3.bf16.xpose.msra.mxu1 %v1368_v38  ;;  %2201 = vmatprep.mubr.msk.bf16.mxu1 %vm2349_vm0, %v2347_v5  ;;  %v2291_v38 = vld [vmem:[%s2836_s12 + $0x60] ss:$8 sps:$4 sm:$0xff]  }
 0x79e   : > { %2211 = vmatprep.subr.bf16.mxu1 %v2347_v5 }
 0x7a4   : > { %2202 = vmatmul.mubr.msk.bf16.vlgmr.msra.gmra.mrb[20].mxu1 %vm861_vm1, %v1361_v39  ;;  %v2296_v39 = vld [vmem:[%s2836_s12 + $0x74] ss:$8 sps:$4 sm:$0xff]  }
 0x7a5   : > { %2215 = vmatprep.mubr.msk.bf16.mxu1 %vm2349_vm0, %v2347_v5  ;;  %2212 = vmatpush3.bf16.msra.mxu1 %v2271_v61  ;;  %v2304_v61 = vld [vmem:[%s2838_s14 + $0x18] sm:$0xff]  }
 0x7a6   : > { %2213 = vmatprep.subr.bf16.mxu1 %v2347_v5 }
 0x7a9   : > { %2214 = vmatpush3.bf16.msra.mxu1 %v2272_v10 }
 0x86f   : > { %v1297_v41 = vpop.f32.mrb[16].mxu1 }
 0x870   : > { %v1303_v42 = vpack.c.bf16 %v1297_v41, %v1297_v41  ;;  %v2189_v43 = vpop.f32.mrb[17].mxu1  ;;  %v2297_v41 = vld [vmem:[%s2838_s14 + $0x40] sm:$0xff]  }
 0x871   : > { %v1300_v44 = vpop.f32.mrb[18].mxu1  ;;  %v2299_v43 = vld [vmem:[%s2838_s14 + $0x48] sm:$0xff]   ;;  %2097 = vmatprep.subr.bf16.mxu1 %v2297_v41 }
 0x872   : > { %v2190_v45 = vpop.f32.mrb[19].mxu1  ;;  %2196 = vmatmul.mubr.msk.bf16.vlgmr.msra.gmra.mrb[20].mxu0 %vm861_vm1, %v1303_v42  ;;  %v2298_v42 = vld [vmem:[%s2838_s14] sm:$0xff]   ;;  %v2300_v44 = vld [vmem:[%s2838_s14 + $0x8] sm:$0xff]  }
 0x873   : > { %2207 = vmatprep.mubr.msk.bf16.mxu0 %vm2349_vm0, %v2347_v5 }
 0x877   : > { %v1404_v46 = vpop.f32.mrb[20].mxu1 }
 0x878   : > { %v2203_v47 = vpop.f32.mrb[21].mxu1  ;;  %v1410_v48 = vsel %vm908_vm3, %v1404_v46, -inf }
 0x879   : > { %1411 = vmax.xlane.f32.xlu0 %v1410_v48  ;;  %v1407_v49 = vpop.f32.mrb[22].mxu1 }
 0x87a   : > { %v2204_v50 = vpop.f32.mrb[23].mxu1  ;;  %v2023_v49 = vld [vmem:[%s2834_s10] ss:$0 sm:$0xff] }
 0x88f   : > { %1422 = vrot.lane.b32.xlu0 %v2581_v7, %s2352_s17 }
 0x906   : > { %v1412_v51 = vpop.xlane.xlu0 %1411 }
 0x907   : > { %v1413_v52 = vsub.f32 %v1404_v46, %v1412_v51  ;;  %v2024_v51 = vld [vmem:[%s2835_s11] ss:$0 sm:$0xff] }
 0x909   : > { %v1414_v53 = vmul.f32 1.442695, %v1413_v52 }
 0x90a   : > { %v1423_v54 = vpop.permute.xlu0 %1422 }
 0x90b   : > { %2329 = vpow2.f32 %v1414_v53  ;;  %v1428_v57 = vsel %vm924_vm2, %v1423_v54, 0 }
 0x90c   : > { %2206 = vmatpush3.bf16.msra.mxu0 %v1428_v57  ;;  %v2301_v57 = vld [vmem:[%s2838_s14 + $0x50] sm:$0xff]  }
 0x90d   : > { %1704 = vmatprep.subr.bf16.mxu0 %v2275_v24 }
 0x915   : > { %v2330_v59 = vpop.eup %2329 }
 0x916   : > { %v1416_v60 = vsel %vm908_vm3, %v2330_v59, 0.0 }
 0x917   : > { %1417 = vadd.xlane.f32.xlu1 %v1416_v60  ;;  %v2303_v60 = vld [vmem:[%s2838_s14 + $0x58] sm:$0xff]  }
 0x945   : > { %v1353_v7 = vpop.f32.mrb[20].mxu0 }
 0x946   : > { %v1359_v62 = vadd.f32 %v1353_v7, %v2649_v17  ;;  %v2197_v63 = vpop.f32.mrb[21].mxu0  ;;  %v2305_v7 = vld [vmem:[%s2838_s14 + $0x60] sm:$0xff]  }
 0x947   : > { %v1356_v0 = vpop.f32.mrb[22].mxu0  ;;  %v2307_v63 = vld [vmem:[%s2838_s14 + $0x68] sm:$0xff]  }
 0x948   : > { %v2198_v2 = vpop.f32.mrb[23].mxu0  ;;  %v2308_v0 = vld [vmem:[%s2838_s14 + $0x28] sm:$0xff]  }
 0x949   : > { %v2309_v2 = vld [vmem:[%s2838_s14 + $0x70] sm:$0xff]  }
 0x9a4   : > { %v1418_v3 = vpop.xlane.xlu1 %1417 }
 0x9a5   : > { %2331 = vrcp.f32 %v1418_v3  ;;  %v2310_v3 = vld [vmem:[%s2838_s14 + $0x30] sm:$0xff]  }
 0x9af   : > { %v2332_v6 = vpop.eup %2331 }
 0x9b0   : > { %v1420_v8 = vmul.f32 %v2332_v6, %v2330_v59  ;;  %v2302_v59 = vld [vmem:[%s2838_s14 + $0x10] sm:$0xff]   ;;  %v2311_v6 = vld [vmem:[%s2838_s14 + $0x78] sm:$0xff]  }
 0x9b2   : > { %v1421_v9 = vpack.c.bf16 %v1420_v8, %v1420_v8  ;;  %v2312_v8 = vld [vmem:[%s2838_s14 + $0x38] sm:$0xff]  }
 0x9b4   : > { %2208 = vmatmul.mubr.msk.bf16.vlgmr.msra.gmra.mrb[24].mxu0 %vm908_vm3, %v1421_v9  ;;  %v1553_v9 = vld [vmem:[%s2837_s13] sm:$0x3] }
 0x9b5   : > { %1736 = vmatprep.mubr.bf16.mxu0 %v2348_v29  ;;  %1705 = vmatpush1.bf16.msra.mxu0 %v2273_v23  ;;  %v1617_v10 = vrot.slane %v1553_v9, %v728_v56 }
 0x9b6   : > { %1706 = vmatprep.subr.bf16.mxu0 %v2278_v25 }
 0xa87   : > { %v1464_v5 = vpop.f32.mrb[24].mxu0 }
 0xa88   : > { %v1470_v11 = vpack.c.bf16 %v1464_v5, %v1464_v5  ;;  %v2209_v12 = vpop.f32.mrb[25].mxu0  ;;  %v1621_v5 = vrot.slane %v1553_v9, %v732_v58 }
 0xa89   : > { %v1467_v13 = vpop.f32.mrb[26].mxu0 }
 0xa8a   : > { %v2210_v14 = vpop.f32.mrb[27].mxu0  ;;  %2216 = vmatmul.mubr.msk.bf16.vlgmr.msra.gmra.mrb[24].mxu1 %vm861_vm1, %v1470_v11 }
 0xa8b   : > { %2098 = vmatpush3.bf16.msra.mxu1 %v2298_v42 }
 0xa8c   : > { %2099 = vmatprep.subr.bf16.mxu1 %v2299_v43 }
 0xa8f   : > { %2100 = vmatpush3.bf16.msra.mxu1 %v2300_v44 }
 0xa90   : > { %2101 = vmatprep.subr.bf16.mxu1 %v2301_v57 }
 0xa93   : > { %2102 = vmatpush3.bf16.msra.mxu1 %v2302_v59 }
 0xa94   : > { %2103 = vmatprep.subr.bf16.mxu1 %v2303_v60 }
 0xa97   : > { %2104 = vmatpush3.bf16.msra.mxu1 %v2304_v61 }
 0xa98   : > { %2105 = vmatprep.subr.bf16.mxu1 %v2305_v7 }
 0xb5d   : > { %v1520_v17 = vpop.f32.mrb[24].mxu1 }
 0xb5e   : > { %v1526_v18 = vadd.f32 %v1520_v17, %v1359_v62  ;;  %v2217_v19 = vpop.f32.mrb[25].mxu1  ;;  %v2306_v62 = vld [vmem:[%s2838_s14 + $0x20] sm:$0xff]  }
 0xb5f   : > { %v1523_v29 = vpop.f32.mrb[26].mxu1  ;;  %2106 = vmatpush3.bf16.msra.mxu1 %v2306_v62 }
 0xb60   : > { %v1533_v20 = vadd.f32 %v2022_v15, %v1526_v18  ;;  %v2218_v21 = vpop.f32.mrb[27].mxu1  ;;  %2107 = vmatprep.subr.bf16.mxu1 %v2307_v63 }
 0xb62   : > { %v2700_v22 = vadd.f32 %v1533_v20, %v2456_v1  ;;  %v2276_v1 = vld [vmem:[%s2836_s12 + $0x10] ss:$8 sps:$4 sm:$0xff]  }
 0xb63   : > { %1707 = vmatpush1.bf16.msra.mxu0 %v2276_v1  ;;  %2108 = vmatpush3.bf16.msra.mxu1 %v2308_v0 }
 0xb64   : > { %1587 = vadd.xlane.f32.xlu1 %v2700_v22  ;;  %1708 = vmatprep.subr.bf16.mxu0 %v2281_v26 }
 0xb65   : > { %2109 = vmatprep.subr.bf16.mxu1 %v2309_v2 }
 0xb67   : > { %1709 = vmatpush1.bf16.msra.mxu0 %v2279_v27  ;;  %2110 = vmatpush3.bf16.msra.mxu1 %v2310_v3 }
 0xb68   : > { %1710 = vmatprep.subr.bf16.mxu0 %v2284_v4  ;;  %2111 = vmatprep.subr.bf16.mxu1 %v2311_v6 }
 0xb6b   : > { %1711 = vmatpush1.bf16.msra.mxu0 %v2282_v16  ;;  %2112 = vmatpush3.bf16.msra.mxu1 %v2312_v8 }
 0xb6c   : > { %1712 = vmatprep.subr.bf16.mxu0 %v2287_v33 }
 0xb6f   : > { %1713 = vmatpush1.bf16.msra.mxu0 %v2285_v34 }
 0xb70   : > { %1714 = vmatprep.subr.bf16.mxu0 %v2290_v35 }
 0xb73   : > { %1715 = vmatpush1.bf16.msra.mxu0 %v2288_v36 }
 0xb74   : > { %1716 = vmatprep.subr.bf16.mxu0 %v2293_v37 }
 0xb77   : > { %1717 = vmatpush1.bf16.msra.mxu0 %v2291_v38 }
 0xb78   : > { %1718 = vmatprep.subr.bf16.mxu0 %v2296_v39 }
 0xb7b   : > { %1719 = vmatpush1.bf16.msra.mxu0 %v2294_v40 }
 0xbf1   : > { %v1588_v28 = vpop.xlane.xlu1 %1587 }
 0xbf2   : > { %v1589_v30 = vmul.f32 0.0078125, %v1588_v28 }
 0xbf4   : > { %v1590_v31 = vsub.f32 %v2700_v22, %v1589_v30 }
 0xbf6   : > { %v1591_v32 = vmul.f32 %v1590_v31, %v1590_v31 }
 0xbf8   : > { %1592 = vadd.xlane.f32.xlu1 %v1591_v32 }
 0xc85   : > { %v1593_v45 = vpop.xlane.xlu1 %1592 }
 0xc86   : > { %v1594_v46 = vmul.f32 0.0078125, %v1593_v45 }
 0xc88   : > { %v1595_v47 = vadd.f32 1e-05, %v1594_v46 }
 0xc8a   : > { %2333 = vrsqrt.f32 %v1595_v47 }
 0xc94   : > { %v2334_v48 = vpop.eup %2333 }
 0xc95   : > { %v1597_v50 = vmul.f32 %v2334_v48, %v1590_v31  ;;  %v2057_v31 = vld [vmem:[%s2839_s15] ss:$0 sm:$0xff] }
 0xc97   : > { %v1604_v52 = vmul.f32 %v2023_v49, %v1597_v50 }
 0xc99   : > { %v1611_v53 = vadd.f32 %v2024_v51, %v1604_v52 }
 0xc9b   : > { %v1612_v54 = vpack.c.bf16 %v1611_v53, %v1611_v53 }
 0xc9d   : > { %1737 = vmatmul.mubr.bf16.vlgmr.msra.gmra.mrb[28].mxu0 %v1612_v54 }
 0xd70   : > { %v1738_v11 = vpop.f32.mrb[28].mxu0 }
 0xd71   : > { %v1739_v12 = vadd.f32 %v1738_v11, %v1617_v10  ;;  %v1740_v13 = vpop.f32.mrb[29].mxu0 }
 0xd72   : > { %v1741_v14 = vadd.f32 %v1740_v13, %v1621_v5  ;;  %v1742_v15 = vpop.f32.mrb[30].mxu0 }
 0xd73   : > { %v1747_v17 = vmul.f32 0.70710677, %v1739_v12  ;;  %v1743_v18 = vpop.f32.mrb[31].mxu0  ;;  %v1745_v21 = vmul.f32 0.5, %v1739_v12 }
 0xd74   : > { %v1748_v19 = vmul.f32 0.70710677, %v1741_v14  ;;  %v1746_v24 = vmul.f32 0.5, %v1741_v14 }
 0xd75   : > { %2335 = verf.f32 %v1747_v17 }
 0xd76   : > { %2337 = verf.f32 %v1748_v19 }
 0xd7f   : > { %v2336_v29 = vpop.eup %2335 }
 0xd80   : > { %v2338_v20 = vpop.eup %2337  ;;  %v1751_v23 = vadd.f32 1.0, %v2336_v29 }
 0xd81   : > { %v1752_v56 = vadd.f32 1.0, %v2338_v20 }
 0xd82   : > { %v1753_v25 = vmul.f32 %v1751_v23, %v1745_v21 }
 0xd83   : > { %v1754_v55 = vmul.f32 %v1752_v56, %v1746_v24 }
 0xd84   : > { %v1755_v1 = vpack.c.bf16 %v1753_v25, %v1753_v25 }
 0xd85   : > { %v1756_v58 = vpack.c.bf16 %v1754_v55, %v1754_v55 }
 0xd87   : > { %1885 = vmatprep.mubr.bf16.mxu1 %v1756_v58 }
 0xd88   : > { %1886 = vmatmul.mubr.bf16.vlgmr.msra.gmra.mrb[28].mxu1 %v1755_v1 }
 0xe5b   : > { %v2113_v26 = vpop.f32.mrb[28].mxu1 }
 0xe5c   : > { %v2114_v27 = vpop.f32.mrb[29].mxu1 }
 0xe5d   : > { %v2115_v28 = vadd.f32 %v2114_v27, %v2113_v26  ;;  %v2116_v30 = vpop.f32.mrb[30].mxu1 }
 0xe5e   : > { %v2117_v32 = vpop.f32.mrb[31].mxu1 }
 0xe5f   : > { %v1893_v4 = vadd.f32 %v2115_v28, %v2700_v22 }
 0xe61   : > { %v1900_v16 = vadd.f32 %v2057_v31, %v1893_v4 }
 0xe63   : > { %1901 = vst [vmem:[%s533_s26] sm:$0xff] %v1900_v16 }
 0xe64 PF: > { %s26_s21 = sadd.s32 1, %s2345_s21  }
 0xe65   : > { %p23_p4 = scmp.ge.s32.totalorder %s26_s21, 4  }
 0xe67   :  { %25 = sbr.rel (!%p23_p4) target bundleno = 2 (0x2), region = 117 }

// kernel: multiscale_apply.4
= control target key start
LH: loop header
LB: loop body
LE: loop exit
PB: predicated region body
PF: predicated region fallthrough
CT: control target
= control target key end

     0   :  { %s2292_s25 = smov 0   ;;  %s2665_s0 = inlined_call_operand.vmem [shape: f32[2,8,128], index: 0, kind: input, shape index: {}]   ;;  %s2666_s1 = inlined_call_operand.vmem [shape: f32[1,128], index: 1, kind: input, shape index: {}]   ;;  %s2667_s2 = inlined_call_operand.vmem [shape: f32[1,128], index: 2, kind: input, shape index: {}]   ;;  %s2668_s3 = inlined_call_operand.vmem [shape: bf16[128,384], index: 3, kind: input, shape index: {}]   ;;  %s2669_s4 = inlined_call_operand.vmem [shape: f32[1,384], index: 4, kind: input, shape index: {}]   ;;  %s2670_s5 = inlined_call_operand.vmem [shape: bf16[128,128], index: 5, kind: input, shape index: {}]   ;;  %s2671_s6 = inlined_call_operand.vmem [shape: f32[1,128], index: 6, kind: input, shape index: {}]   ;;  %s2672_s7 = inlined_call_operand.vmem [shape: f32[1,128], index: 7, kind: input, shape index: {}]   ;;  %s2673_s8 = inlined_call_operand.vmem [shape: f32[1,128], index: 8, kind: input, shape index: {}]   ;;  %s2674_s9 = inlined_call_operand.vmem [shape: bf16[128,256], index: 9, kind: input, shape index: {}]   ;;  %s2675_s10 = inlined_call_operand.vmem [shape: f32[1,256], index: 10, kind: input, shape index: {}]   ;;  %s2676_s11 = inlined_call_operand.vmem [shape: bf16[256,128], index: 11, kind: input, shape index: {}]   ;;  %s2677_s12 = inlined_call_operand.vmem [shape: f32[1,128], index: 12, kind: input, shape index: {}]   ;;  %s2678_s13 = inlined_call_operand.vmem [shape: f32[2,8,128], index: 13, kind: output, shape index: {}]  }
   0x1 LB: > { %s1840_s26 = sadd.s32 4294967295, %s2214_s25   ;;  %p1844_p0 = scmp.ge.s32.totalorder %s2214_s25, 1  ;;  %s2214_s25 = sphi %s2292_s25, %s23_s25  }
   0x2   : > { %p386_p1 = scmp.lt.s32.totalorder %s2214_s25, 3 }
   0x4   : > { %p387_p2 = pnand %p1844_p0, %p386_p1 }
   0x5   : > { %p428_p3 = scmp.lt.s32.totalorder (!%p387_p2), %s1840_s26, 1  ;;  %v2104_v1 = vld [vmem:[%s2668_s3 + $0x4] ss:$12 sps:$4 sm:$0xff] (!%p387_p2)   ;;  %v2106_v2 = vld [vmem:[%s2668_s3] ss:$12 sps:$4 sm:$0xff] (!%p387_p2)   ;;  %v2216_v3 = vmov (!%p387_p2), 0.0   ;;  %v518_v41 = vlaneseq (!%p387_p2) }
   0x6   : > { %390 = sbr.rel (%p387_p2) target bundleno = 3684 (0xe64), region = 72  ;;  %1990 = vmatprep.subr.bf16.mxu1 (!%p387_p2), %v2216_v3  ;;  %v2107_v4 = vld [vmem:[%s2668_s3 + $0x8] ss:$12 sps:$4 sm:$0xff] (!%p387_p2)   ;;  %v2110_v6 = vld [vmem:[%s2668_s3 + $0x18] ss:$12 sps:$4 sm:$0xff] (!%p387_p2)   ;;  %661 = vmatprep.subr.bf16.mxu0 (!%p387_p2), %v2104_v1  ;;  %v2217_v25 = vmov (!%p387_p2), 0  }
   0x7   : > { %v2108_v5 = vld [vmem:[%s2668_s3 + $0x1c] ss:$12 sps:$4 sm:$0xff] (!%p387_p2)   ;;  %v2111_v7 = vld [vmem:[%s2668_s3 + $0x20] ss:$12 sps:$4 sm:$0xff] (!%p387_p2)   ;;  %662 = vmatpush1.bf16.msra.mxu0 (!%p387_p2), %v2106_v2  ;;  %1991 = vmatpush3.bf16.msra.mxu1 (!%p387_p2), %v2107_v4  ;;  %v2115_v14 = vld [vmem:[%s2668_s3 + $0x38] ss:$12 sps:$4 sm:$0xff] (!%p387_p2)  }
   0x8   : > { %v2112_v8 = vld [vmem:[%s2668_s3 + $0x34] ss:$12 sps:$4 sm:$0xff] (!%p387_p2)   ;;  %663 = vmatprep.subr.bf16.mxu0 (!%p387_p2), %v2108_v5  ;;  %1992 = vmatprep.subr.bf16.mxu1 (!%p387_p2), %v2216_v3  ;;  %v2114_v13 = vld [vmem:[%s2668_s3 + $0x30] ss:$12 sps:$4 sm:$0xff] (!%p387_p2)   ;;  %v2116_v15 = vld [vmem:[%s2668_s3 + $0x4c] ss:$12 sps:$4 sm:$0xff] (!%p387_p2)  }
   0x9   : > { %v2118_v16 = vld [vmem:[%s2668_s3 + $0x48] ss:$12 sps:$4 sm:$0xff] (!%p387_p2)   ;;  %v2119_v17 = vld [vmem:[%s2668_s3 + $0x50] ss:$12 sps:$4 sm:$0xff] (!%p387_p2)   ;;  %v2122_v19 = vld [vmem:[%s2668_s3 + $0x60] ss:$12 sps:$4 sm:$0xff] (!%p387_p2)   ;;  %693 = vmatprep.mubr.bf16.mxu0 (!%p387_p2), %v2217_v25 }
   0xa   : > { %v2120_v18 = vld [vmem:[%s2668_s3 + $0x64] ss:$12 sps:$4 sm:$0xff] (!%p387_p2)   ;;  %v2123_v20 = vld [vmem:[%s2668_s3 + $0x68] ss:$12 sps:$4 sm:$0xff] (!%p387_p2)   ;;  %v2127_v23 = vld [vmem:[%s2668_s3 + $0x80] ss:$12 sps:$4 sm:$0xff] (!%p387_p2)  }
   0xb   : > { %664 = vmatpush1.bf16.msra.mxu0 (!%p387_p2), %v2110_v6  ;;  %1993 = vmatpush3.bf16.msra.mxu1 (!%p387_p2), %v2111_v7  ;;  %v2124_v21 = vld [vmem:[%s2668_s3 + $0x7c] ss:$12 sps:$4 sm:$0xff] (!%p387_p2)   ;;  %v2126_v22 = vld [vmem:[%s2668_s3 + $0x78] ss:$12 sps:$4 sm:$0xff] (!%p387_p2)   ;;  %v2128_v24 = vld [vmem:[%s2668_s3 + $0x94] ss:$12 sps:$4 sm:$0xff] (!%p387_p2)  }
   0xc   : > { %665 = vmatprep.subr.bf16.mxu0 (!%p387_p2), %v2112_v8  ;;  %1994 = vmatprep.subr.bf16.mxu1 (!%p387_p2), %v2216_v3  ;;  %vm2218_vm0 = vmmov (!%p387_p2), 0   ;;  %v2130_v26 = vld [vmem:[%s2668_s3 + $0x90] ss:$12 sps:$4 sm:$0xff] (!%p387_p2)   ;;  %v2131_v27 = vld [vmem:[%s2668_s3 + $0x98] ss:$12 sps:$4 sm:$0xff] (!%p387_p2)   ;;  %v2407_v42 = vshrl.u32 (!%p387_p2), %v518_v41, 7 }
   0xd   : > { %s2680_s26 = smov (!%p428_p3, %s1840_s26), 1  ;;  %2006 = vmatprep.mubr.msk.bf16.mxu1 %vm2218_vm0, %v2216_v3  ;;  %v2132_v28 = vld [vmem:[%s2668_s3 + $0xac] ss:$12 sps:$4 sm:$0xff]   ;;  %v2134_v29 = vld [vmem:[%s2668_s3 + $0xa8] ss:$12 sps:$4 sm:$0xff]   ;;  %vm809_vm1 = vcmask 1043456  }
   0xe   : > { %s1845_s27 = sshll.u32 %s2680_s26, 3  ;;  %v2135_v30 = vld [vmem:[%s2668_s3 + $0xb0] ss:$12 sps:$4 sm:$0xff]   ;;  %v1847_v35 = vld [vmem:[%s2666_s1] ss:$0 sm:$0xff]  ;;  %v520_v43 = vsub.s32 0, %v2407_v42 }
   0xf   : > { %s431_s30 = scalar_lea.vmem %s2665_s0, %s1845_s27  ;;  %666 = vmatpush1.bf16.msra.mxu0 %v2114_v13  ;;  %1995 = vmatpush3.bf16.msra.mxu1 %v2115_v14  ;;  %v1848_v37 = vld [vmem:[%s2667_s2] ss:$0 sm:$0xff]  ;;  %v528_v44 = vsub.s32 2, %v2407_v42  ;;  %v524_v46 = vsub.s32 1, %v2407_v42  ;;  %vm746_vm2 = vcmask 261120   ;;  %s2219_s29 = smov 96  }
  0x10   : > { %v2308_v0 = vld [vmem:[%s431_s30] sm:$0xff]  ;;  %1996 = vmatprep.subr.bf16.mxu1 %v2216_v3  ;;  %667 = vmatprep.subr.bf16.mxu0 %v2116_v15  ;;  %vm793_vm3 = vcmask 64512   ;;  %s2220_s30 = smov 64   ;;  %s2221_s22 = smov 32  }
  0x11   : > { %490 = vadd.xlane.f32.xlu0 %v2308_v0  ;;  %v472_v45 = vld [vmem:[%s2669_s4] sm:$0x7]  ;;  %s435_s23 = scalar_lea.vmem %s2678_s13, %s1845_s27 }
  0x12   : > { %v521_v47 = vrot.slane %v472_v45, %v520_v43  ;;  %v529_v48 = vrot.slane %v472_v45, %v528_v44  ;;  %v525_v49 = vrot.slane %v472_v45, %v524_v46  ;;  %v2137_v44 = vld [vmem:[%s2670_s5 + $0x8] sm:$0xff]  }
  0x13   : > { %668 = vmatpush1.bf16.msra.mxu0 %v2118_v16  ;;  %1997 = vmatpush3.bf16.msra.mxu1 %v2119_v17 }
  0x14   : > { %1998 = vmatprep.subr.bf16.mxu1 %v2216_v3  ;;  %669 = vmatprep.subr.bf16.mxu0 %v2120_v18 }
  0x17   : > { %670 = vmatpush1.bf16.msra.mxu0 %v2122_v19  ;;  %1999 = vmatpush3.bf16.msra.mxu1 %v2123_v20 }
  0x18   : > { %671 = vmatprep.subr.bf16.mxu0 %v2124_v21  ;;  %2000 = vmatprep.subr.bf16.mxu1 %v2216_v3 }
  0x1b   : > { %672 = vmatpush1.bf16.msra.mxu0 %v2126_v22  ;;  %2001 = vmatpush3.bf16.msra.mxu1 %v2127_v23 }
  0x1c   : > { %673 = vmatprep.subr.bf16.mxu0 %v2128_v24  ;;  %2002 = vmatprep.subr.bf16.mxu1 %v2216_v3 }
  0x1f   : > { %674 = vmatpush1.bf16.msra.mxu0 %v2130_v26  ;;  %2003 = vmatpush3.bf16.msra.mxu1 %v2131_v27 }
  0x20   : > { %675 = vmatprep.subr.bf16.mxu0 %v2132_v28  ;;  %2004 = vmatprep.subr.bf16.mxu1 %v2216_v3 }
  0x23   : > { %676 = vmatpush1.bf16.msra.mxu0 %v2134_v29  ;;  %2005 = vmatpush3.bf16.msra.mxu1 %v2135_v30 }
  0x24   : > { %2016 = vmatprep.subr.bf16.mxu1 %v2216_v3  ;;  %2010 = vmatprep.subr.bf16.mxu0 %v2216_v3 }
  0x9e   : > { %v491_v9 = vpop.xlane.xlu0 %490 }
  0x9f   : > { %v493_v10 = vmul.f32 0.0078125, %v491_v9 }
  0xa1   : > { %v494_v11 = vsub.f32 %v2308_v0, %v493_v10 }
  0xa3   : > { %v495_v12 = vmul.f32 %v494_v11, %v494_v11 }
  0xa5   : > { %496 = vadd.xlane.f32.xlu0 %v495_v12 }
 0x132   : > { %v497_v31 = vpop.xlane.xlu0 %496 }
 0x133   : > { %v498_v32 = vmul.f32 0.0078125, %v497_v31 }
 0x135   : > { %v499_v33 = vadd.f32 1e-05, %v498_v32 }
 0x137   : > { %2184 = vrsqrt.f32 %v499_v33  ;;  %v2138_v33 = vld [vmem:[%s2670_s5 + $0x10] sm:$0xff]  }
 0x141   : > { %v2185_v34 = vpop.eup %2184 }
 0x142   : > { %v501_v36 = vmul.f32 %v2185_v34, %v494_v11  ;;  %v2139_v34 = vld [vmem:[%s2670_s5 + $0x18] sm:$0xff]  }
 0x144   : > { %v508_v38 = vmul.f32 %v1847_v35, %v501_v36 }
 0x146   : > { %v515_v39 = vadd.f32 %v1848_v37, %v508_v38 }
 0x148   : > { %v516_v40 = vpack.c.bf16 %v515_v39, %v515_v39 }
 0x14a   : > { %694 = vmatmul.mubr.bf16.vlgmr.msra.gmra.mrb[0].mxu0 %v516_v40  ;;  %2007 = vmatmul.mubr.bf16.vlgmr.msra.gmra.mrb[0].mxu1 %v516_v40  ;;  %v2136_v40 = vld [vmem:[%s2670_s5] sm:$0xff]  }
 0x14b   : > { %2012 = vmatprep.mubr.msk.bf16.mxu0 %vm2218_vm0, %v2216_v3  ;;  %2018 = vmatprep.mubr.msk.bf16.mxu1 %vm2218_vm0, %v2216_v3 }
 0x21d   : > { %v695_v50 = vpop.f32.mrb[0].mxu0  ;;  %v736_v51 = vpop.f32.mrb[0].mxu1 }
 0x21e   : > { %v696_v52 = vadd.f32 %v695_v50, %v521_v47  ;;  %v737_v53 = vadd.f32 %v736_v51, %v529_v48  ;;  %v697_v54 = vpop.f32.mrb[1].mxu0  ;;  %v2008_v55 = vpop.f32.mrb[1].mxu1 }
 0x21f   : > { %v698_v56 = vadd.f32 %v697_v54, %v525_v49  ;;  %v699_v57 = vpop.f32.mrb[2].mxu0  ;;  %v739_v58 = vpop.f32.mrb[2].mxu1 }
 0x220   : > { %v2419_v59 = vpack.c.bf16 %v737_v53, %v737_v53  ;;  %v700_v60 = vpop.f32.mrb[3].mxu0  ;;  %v2009_v61 = vpop.f32.mrb[3].mxu1  ;;  %v742_v62 = vmul.f32 0.17677669, %v696_v52 }
 0x221   : > { %v2421_v63 = vpack.c.bf16 %v698_v56, %v698_v56 }
 0x222   : > { %v811_v1 = vsel %vm809_vm1, %v2419_v59, 0  ;;  %v2430_v4 = vpack.c.bf16 %v742_v62, %v742_v62 }
 0x223   : > { %2017 = vmatpush3.bf16.msra.mxu1 %v811_v1  ;;  %858 = vrot.lane.b32.xlu1 %v2421_v63, %s2219_s29  ;;  %v751_v2 = vsel %vm746_vm2, %v2421_v63, 0 }
 0x224   : > { %2011 = vmatpush3.bf16.xpose.msra.mxu0 %v751_v2  ;;  %2028 = vmatprep.subr.bf16.mxu1 %v2216_v3 }
 0x225   : > { %2022 = vmatprep.subr.bf16.mxu0 %v2216_v3 }
 0x227   : > { %855 = vrot.lane.b32.xlu1 %v2430_v4, %s2219_s29 }
 0x22b   : > { %2013 = vmatmul.mubr.msk.bf16.vlgmr.msra.gmra.mrb[4].mxu0 %vm746_vm2, %v2430_v4 }
 0x22c   : > { %2024 = vmatprep.mubr.msk.bf16.mxu0 %vm2218_vm0, %v2216_v3 }
 0x295   : > { %v859_v5 = vpop.permute.xlu1 %858 }
 0x296   : > { %v864_v6 = vsel %vm746_vm2, %v859_v5, 0 }
 0x297   : > { %2023 = vmatpush3.bf16.xpose.msra.mxu0 %v864_v6 }
 0x298   : > { %2034 = vmatprep.subr.bf16.mxu0 %v2216_v3 }
 0x299   : > { %v856_v7 = vpop.permute.xlu1 %855 }
 0x29e   : > { %2025 = vmatmul.mubr.msk.bf16.vlgmr.msra.gmra.mrb[8].mxu0 %vm746_vm2, %v856_v7 }
 0x29f   : > { %2038 = vmatprep.mubr.msk.bf16.mxu0 %vm2218_vm0, %v2216_v3  ;;  %2035 = vmatpush3.bf16.msra.mxu0 %v2138_v33 }
 0x2a0   : > { %2036 = vmatprep.subr.bf16.mxu0 %v2216_v3 }
 0x2a3   : > { %2037 = vmatpush3.bf16.msra.mxu0 %v2139_v34 }
 0x2a4   : > { %2050 = vmatprep.subr.bf16.mxu0 %v2216_v3 }
 0x2fe   : > { %v787_v8 = vpop.f32.mrb[4].mxu0 }
 0x2ff   : > { %v2014_v9 = vpop.f32.mrb[5].mxu0  ;;  %v794_v10 = vsel %vm793_vm3, %v787_v8, -inf }
 0x300   : > { %795 = vmax.xlane.f32.xlu0 %v794_v10  ;;  %v790_v11 = vpop.f32.mrb[6].mxu0 }
 0x301   : > { %v2015_v12 = vpop.f32.mrb[7].mxu0 }
 0x371   : > { %v900_v13 = vpop.f32.mrb[8].mxu0 }
 0x372   : > { %v2026_v14 = vpop.f32.mrb[9].mxu0  ;;  %v906_v15 = vsel %vm793_vm3, %v900_v13, -inf }
 0x373   : > { %907 = vmax.xlane.f32.xlu1 %v906_v15  ;;  %v903_v16 = vpop.f32.mrb[10].mxu0 }
 0x374   : > { %v2027_v17 = vpop.f32.mrb[11].mxu0 }
 0x384   : > { %1078 = vrot.lane.b32.xlu1 %v2430_v4, %s2220_s30 }
 0x38d   : > { %v796_v18 = vpop.xlane.xlu0 %795 }
 0x38e   : > { %v797_v19 = vsub.f32 %v787_v8, %v796_v18 }
 0x390   : > { %v798_v20 = vmul.f32 1.442695, %v797_v19 }
 0x392   : > { %2186 = vpow2.f32 %v798_v20 }
 0x39c   : > { %v2187_v21 = vpop.eup %2186 }
 0x39d   : > { %v800_v22 = vsel %vm793_vm3, %v2187_v21, 0.0 }
 0x39e   : > { %801 = vadd.xlane.f32.xlu0 %v800_v22 }
 0x400   : > { %v908_v23 = vpop.xlane.xlu1 %907 }
 0x401   : > { %v909_v24 = vsub.f32 %v900_v13, %v908_v23 }
 0x403   : > { %v910_v26 = vmul.f32 1.442695, %v909_v24 }
 0x404   : > { %v1079_v58 = vpop.permute.xlu1 %1078 }
 0x405   : > { %2188 = vpow2.f32 %v910_v26 }
 0x40f   : > { %v2189_v27 = vpop.eup %2188 }
 0x410   : > { %v912_v28 = vsel %vm793_vm3, %v2189_v27, 0.0 }
 0x411   : > { %913 = vadd.xlane.f32.xlu0 %v912_v28  ;;  %v2141_v28 = vld [vmem:[%s2670_s5 + $0x28] sm:$0xff]  }
 0x427   : > { %919 = vrot.lane.b32.xlu0 %v2419_v59, %s2219_s29 }
 0x42b   : > { %v802_v29 = vpop.xlane.xlu0 %801  ;;  %1080 = vrot.lane.b32.xlu0 %v2421_v63, %s2220_s30 }
 0x42c   : > { %2190 = vrcp.f32 %v802_v29 }
 0x436   : > { %v2191_v30 = vpop.eup %2190 }
 0x437   : > { %v804_v31 = vmul.f32 %v2191_v30, %v2187_v21 }
 0x439   : > { %v805_v32 = vpack.c.bf16 %v804_v31, %v804_v31 }
 0x43b   : > { %2019 = vmatmul.mubr.msk.bf16.vlgmr.msra.gmra.mrb[4].mxu1 %vm793_vm3, %v805_v32 }
 0x43c   : > { %2030 = vmatprep.mubr.msk.bf16.mxu1 %vm2218_vm0, %v2216_v3 }
 0x49e   : > { %v914_v35 = vpop.xlane.xlu0 %913 }
 0x49f   : > { %2192 = vrcp.f32 %v914_v35 }
 0x4a2   : > { %v920_v36 = vpop.permute.xlu0 %919 }
 0x4a3   : > { %v925_v37 = vsel %vm809_vm1, %v920_v36, 0 }
 0x4a4   : > { %2029 = vmatpush3.bf16.msra.mxu1 %v925_v37 }
 0x4a5   : > { %2042 = vmatprep.subr.bf16.mxu1 %v2216_v3 }
 0x4a6   : > { %v1081_v51 = vpop.permute.xlu0 %1080 }
 0x4a7   : > { %v1086_v56 = vsel %vm746_vm2, %v1081_v51, 0 }
 0x4a9   : > { %v2193_v38 = vpop.eup %2192 }
 0x4aa   : > { %v916_v39 = vmul.f32 %v2193_v38, %v2189_v27 }
 0x4ac   : > { %v917_v41 = vpack.c.bf16 %v916_v39, %v916_v39 }
 0x4ae   : > { %2031 = vmatmul.mubr.msk.bf16.vlgmr.msra.gmra.mrb[8].mxu1 %vm793_vm3, %v917_v41 }
 0x4af   : > { %2043 = vmatpush3.bf16.msra.mxu1 %v2136_v40  ;;  %2046 = vmatprep.mubr.msk.bf16.mxu1 %vm2218_vm0, %v2216_v3 }
 0x4b0   : > { %2044 = vmatprep.subr.bf16.mxu1 %v2216_v3 }
 0x4b3   : > { %2045 = vmatpush3.bf16.msra.mxu1 %v2137_v44 }
 0x4b4   : > { %2056 = vmatprep.subr.bf16.mxu1 %v2216_v3 }
 0x50e   : > { %v847_v45 = vpop.f32.mrb[4].mxu1 }
 0x50f   : > { %v853_v47 = vpack.c.bf16 %v847_v45, %v847_v45  ;;  %v2020_v48 = vpop.f32.mrb[5].mxu1 }
 0x510   : > { %v850_v49 = vpop.f32.mrb[6].mxu1 }
 0x511   : > { %v2021_v50 = vpop.f32.mrb[7].mxu1  ;;  %2047 = vmatmul.mubr.msk.bf16.vlgmr.msra.gmra.mrb[12].mxu1 %vm746_vm2, %v853_v47  ;;  %v2142_v49 = vld [vmem:[%s2670_s5 + $0x30] sm:$0xff]  }
 0x512   : > { %2058 = vmatprep.mubr.msk.bf16.mxu1 %vm2218_vm0, %v2216_v3 }
 0x581   : > { %v961_v52 = vpop.f32.mrb[8].mxu1 }
 0x582   : > { %v967_v53 = vpack.c.bf16 %v961_v52, %v961_v52  ;;  %v2032_v54 = vpop.f32.mrb[9].mxu1 }
 0x583   : > { %v964_v55 = vpop.f32.mrb[10].mxu1 }
 0x584   : > { %v2033_v57 = vpop.f32.mrb[11].mxu1  ;;  %2039 = vmatmul.mubr.msk.bf16.vlgmr.msra.gmra.mrb[12].mxu0 %vm746_vm2, %v967_v53 }
 0x585   : > { %2051 = vmatpush3.bf16.xpose.msra.mxu0 %v1086_v56  ;;  %2052 = vmatprep.mubr.msk.bf16.mxu0 %vm2218_vm0, %v2216_v3 }
 0x586   : > { %2062 = vmatprep.subr.bf16.mxu0 %v2216_v3 }
 0x58c   : > { %2053 = vmatmul.mubr.msk.bf16.vlgmr.msra.gmra.mrb[16].mxu0 %vm746_vm2, %v1079_v58  ;;  %v2143_v58 = vld [vmem:[%s2670_s5 + $0x38] sm:$0xff]  }
 0x58d   : > { %2066 = vmatprep.mubr.msk.bf16.mxu0 %vm2218_vm0, %v2216_v3 }
 0x5e4   : > { %v1072_v60 = vpop.f32.mrb[12].mxu1 }
 0x5e5   : > { %v2048_v61 = vpop.f32.mrb[13].mxu1 }
 0x5e6   : > { %v1075_v62 = vpop.f32.mrb[14].mxu1 }
 0x5e7   : > { %v2049_v1 = vpop.f32.mrb[15].mxu1 }
 0x657   : > { %v1017_v2 = vpop.f32.mrb[12].mxu0 }
 0x658   : > { %v2489_v5 = vadd.f32 %v1072_v60, %v1017_v2  ;;  %v2040_v6 = vpop.f32.mrb[13].mxu0  ;;  %v1893_v2 = vld [vmem:[%s2671_s6] ss:$0 sm:$0xff] }
 0x659   : > { %v1020_v7 = vpop.f32.mrb[14].mxu0 }
 0x65a   : > { %v2041_v8 = vpop.f32.mrb[15].mxu0 }
 0x65f   : > { %v1122_v9 = vpop.f32.mrb[16].mxu0 }
 0x660   : > { %v2054_v10 = vpop.f32.mrb[17].mxu0  ;;  %v1128_v11 = vsel %vm793_vm3, %v1122_v9, -inf }
 0x661   : > { %1129 = vmax.xlane.f32.xlu0 %v1128_v11  ;;  %v1125_v12 = vpop.f32.mrb[18].mxu0  ;;  %v2144_v11 = vld [vmem:[%s2674_s9] ss:$8 sps:$4 sm:$0xff]  }
 0x662   : > { %v2055_v13 = vpop.f32.mrb[19].mxu0  ;;  %v2146_v12 = vld [vmem:[%s2674_s9 + $0x4] ss:$8 sps:$4 sm:$0xff]  }
 0x663   : > { %v2149_v13 = vld [vmem:[%s2674_s9 + $0x14] ss:$8 sps:$4 sm:$0xff]  }
 0x677   : > { %1140 = vrot.lane.b32.xlu0 %v2419_v59, %s2220_s30 }
 0x67b   : > { %1245 = vrot.lane.b32.xlu0 %v2430_v4, %s2221_s22  ;;  %v2140_v4 = vld [vmem:[%s2670_s5 + $0x20] sm:$0xff]  }
 0x67c   : > { %2063 = vmatpush3.bf16.msra.mxu0 %v2140_v4  ;;  %v2153_v4 = vld [vmem:[%s2674_s9 + $0x30] ss:$8 sps:$4 sm:$0xff]  }
 0x67d   : > { %2064 = vmatprep.subr.bf16.mxu0 %v2216_v3 }
 0x680   : > { %2065 = vmatpush3.bf16.msra.mxu0 %v2141_v28  ;;  %v2165_v28 = vld [vmem:[%s2674_s9 + $0x70] ss:$8 sps:$4 sm:$0xff]  }
 0x681   : > { %2076 = vmatprep.subr.bf16.mxu0 %v2216_v3 }
 0x6ee   : > { %v1130_v14 = vpop.xlane.xlu0 %1129 }
 0x6ef   : > { %v1131_v15 = vsub.f32 %v1122_v9, %v1130_v14  ;;  %v2152_v14 = vld [vmem:[%s2674_s9 + $0x24] ss:$8 sps:$4 sm:$0xff]  }
 0x6f1   : > { %v1132_v16 = vmul.f32 1.442695, %v1131_v15  ;;  %v2150_v15 = vld [vmem:[%s2674_s9 + $0x20] ss:$8 sps:$4 sm:$0xff]  }
 0x6f2   : > { %v1141_v17 = vpop.permute.xlu0 %1140 }
 0x6f3   : > { %2194 = vpow2.f32 %v1132_v16  ;;  %v1146_v18 = vsel %vm809_vm1, %v1141_v17, 0 }
 0x6f4   : > { %2057 = vmatpush3.bf16.msra.mxu1 %v1146_v18 }
 0x6f5   : > { %2070 = vmatprep.subr.bf16.mxu1 %v2216_v3 }
 0x6fd   : > { %v2195_v19 = vpop.eup %2194 }
 0x6fe   : > { %v1134_v20 = vsel %vm793_vm3, %v2195_v19, 0.0 }
 0x6ff   : > { %1135 = vadd.xlane.f32.xlu1 %v1134_v20  ;;  %v2155_v20 = vld [vmem:[%s2674_s9 + $0x34] ss:$8 sps:$4 sm:$0xff]  }
 0x710   : > { %1247 = vrot.lane.b32.xlu1 %v2421_v63, %s2221_s22  ;;  %v1246_v63 = vpop.permute.xlu0 %1245 }
 0x78c   : > { %v1136_v21 = vpop.xlane.xlu1 %1135 }
 0x78d   : > { %2196 = vrcp.f32 %v1136_v21  ;;  %v2158_v21 = vld [vmem:[%s2674_s9 + $0x44] ss:$8 sps:$4 sm:$0xff]  }
 0x790   : > { %v1248_v24 = vpop.permute.xlu1 %1247 }
 0x791   : > { %v1253_v27 = vsel %vm746_vm2, %v1248_v24, 0  ;;  %v2159_v24 = vld [vmem:[%s2674_s9 + $0x50] ss:$8 sps:$4 sm:$0xff]  }
 0x797   : > { %v2197_v22 = vpop.eup %2196 }
 0x798   : > { %v1138_v23 = vmul.f32 %v2197_v22, %v2195_v19  ;;  %v2156_v22 = vld [vmem:[%s2674_s9 + $0x40] ss:$8 sps:$4 sm:$0xff]  }
 0x79a   : > { %v1139_v26 = vpack.c.bf16 %v1138_v23, %v1138_v23  ;;  %v2161_v23 = vld [vmem:[%s2674_s9 + $0x54] ss:$8 sps:$4 sm:$0xff]  }
 0x79c   : > { %2059 = vmatmul.mubr.msk.bf16.vlgmr.msra.gmra.mrb[16].mxu1 %vm793_vm3, %v1139_v26  ;;  %v2164_v26 = vld [vmem:[%s2674_s9 + $0x64] ss:$8 sps:$4 sm:$0xff]  }
 0x79d   : > { %2071 = vmatpush3.bf16.xpose.msra.mxu1 %v1253_v27  ;;  %2072 = vmatprep.mubr.msk.bf16.mxu1 %vm2218_vm0, %v2216_v3  ;;  %v2162_v27 = vld [vmem:[%s2674_s9 + $0x60] ss:$8 sps:$4 sm:$0xff]  }
 0x79e   : > { %2082 = vmatprep.subr.bf16.mxu1 %v2216_v3 }
 0x7a4   : > { %2073 = vmatmul.mubr.msk.bf16.vlgmr.msra.gmra.mrb[20].mxu1 %vm746_vm2, %v1246_v63  ;;  %v2167_v63 = vld [vmem:[%s2674_s9 + $0x74] ss:$8 sps:$4 sm:$0xff]  }
 0x7a5   : > { %2086 = vmatprep.mubr.msk.bf16.mxu1 %vm2218_vm0, %v2216_v3  ;;  %2083 = vmatpush3.bf16.msra.mxu1 %v2142_v49  ;;  %v2175_v49 = vld [vmem:[%s2676_s11 + $0x18] sm:$0xff]  }
 0x7a6   : > { %2084 = vmatprep.subr.bf16.mxu1 %v2216_v3 }
 0x7a9   : > { %2085 = vmatpush3.bf16.msra.mxu1 %v2143_v58 }
 0x86f   : > { %v1182_v29 = vpop.f32.mrb[16].mxu1 }
 0x870   : > { %v1188_v30 = vpack.c.bf16 %v1182_v29, %v1182_v29  ;;  %v2060_v31 = vpop.f32.mrb[17].mxu1  ;;  %v2168_v29 = vld [vmem:[%s2676_s11 + $0x40] sm:$0xff]  }
 0x871   : > { %v1185_v32 = vpop.f32.mrb[18].mxu1  ;;  %v2170_v31 = vld [vmem:[%s2676_s11 + $0x48] sm:$0xff]   ;;  %1968 = vmatprep.subr.bf16.mxu1 %v2168_v29 }
 0x872   : > { %v2061_v33 = vpop.f32.mrb[19].mxu1  ;;  %2067 = vmatmul.mubr.msk.bf16.vlgmr.msra.gmra.mrb[20].mxu0 %vm746_vm2, %v1188_v30  ;;  %v2169_v30 = vld [vmem:[%s2676_s11] sm:$0xff]   ;;  %v2171_v32 = vld [vmem:[%s2676_s11 + $0x8] sm:$0xff]  }
 0x873   : > { %2078 = vmatprep.mubr.msk.bf16.mxu0 %vm2218_vm0, %v2216_v3 }
 0x877   : > { %v1289_v34 = vpop.f32.mrb[20].mxu1 }
 0x878   : > { %v2074_v35 = vpop.f32.mrb[21].mxu1  ;;  %v1295_v36 = vsel %vm793_vm3, %v1289_v34, -inf }
 0x879   : > { %1296 = vmax.xlane.f32.xlu0 %v1295_v36  ;;  %v1292_v37 = vpop.f32.mrb[22].mxu1 }
 0x87a   : > { %v2075_v38 = vpop.f32.mrb[23].mxu1  ;;  %v1894_v37 = vld [vmem:[%s2672_s7] ss:$0 sm:$0xff] }
 0x88f   : > { %1307 = vrot.lane.b32.xlu0 %v2419_v59, %s2221_s22 }
 0x906   : > { %v1297_v39 = vpop.xlane.xlu0 %1296 }
 0x907   : > { %v1298_v40 = vsub.f32 %v1289_v34, %v1297_v39  ;;  %v1895_v39 = vld [vmem:[%s2673_s8] ss:$0 sm:$0xff] }
 0x909   : > { %v1299_v41 = vmul.f32 1.442695, %v1298_v40 }
 0x90a   : > { %v1308_v44 = vpop.permute.xlu0 %1307 }
 0x90b   : > { %2198 = vpow2.f32 %v1299_v41  ;;  %v1313_v45 = vsel %vm809_vm1, %v1308_v44, 0 }
 0x90c   : > { %2077 = vmatpush3.bf16.msra.mxu0 %v1313_v45  ;;  %v2172_v45 = vld [vmem:[%s2676_s11 + $0x50] sm:$0xff]  }
 0x90d   : > { %1589 = vmatprep.subr.bf16.mxu0 %v2146_v12 }
 0x915   : > { %v2199_v47 = vpop.eup %2198 }
 0x916   : > { %v1301_v48 = vsel %vm793_vm3, %v2199_v47, 0.0 }
 0x917   : > { %1302 = vadd.xlane.f32.xlu1 %v1301_v48  ;;  %v2174_v48 = vld [vmem:[%s2676_s11 + $0x58] sm:$0xff]  }
 0x945   : > { %v1238_v59 = vpop.f32.mrb[20].mxu0 }
 0x946   : > { %v1244_v50 = vadd.f32 %v1238_v59, %v2489_v5  ;;  %v2068_v51 = vpop.f32.mrb[21].mxu0  ;;  %v2176_v59 = vld [vmem:[%s2676_s11 + $0x60] sm:$0xff]  }
 0x947   : > { %v1241_v52 = vpop.f32.mrb[22].mxu0  ;;  %v2178_v51 = vld [vmem:[%s2676_s11 + $0x68] sm:$0xff]  }
 0x948   : > { %v2069_v53 = vpop.f32.mrb[23].mxu0  ;;  %v2179_v52 = vld [vmem:[%s2676_s11 + $0x28] sm:$0xff]  }
 0x949   : > { %v2180_v53 = vld [vmem:[%s2676_s11 + $0x70] sm:$0xff]  }
 0x9a4   : > { %v1303_v54 = vpop.xlane.xlu1 %1302 }
 0x9a5   : > { %2200 = vrcp.f32 %v1303_v54  ;;  %v2181_v54 = vld [vmem:[%s2676_s11 + $0x30] sm:$0xff]  }
 0x9af   : > { %v2201_v55 = vpop.eup %2200 }
 0x9b0   : > { %v1305_v56 = vmul.f32 %v2201_v55, %v2199_v47  ;;  %v2173_v47 = vld [vmem:[%s2676_s11 + $0x10] sm:$0xff]   ;;  %v2182_v55 = vld [vmem:[%s2676_s11 + $0x78] sm:$0xff]  }
 0x9b2   : > { %v1306_v57 = vpack.c.bf16 %v1305_v56, %v1305_v56  ;;  %v2183_v56 = vld [vmem:[%s2676_s11 + $0x38] sm:$0xff]  }
 0x9b4   : > { %2079 = vmatmul.mubr.msk.bf16.vlgmr.msra.gmra.mrb[24].mxu0 %vm793_vm3, %v1306_v57  ;;  %v1438_v57 = vld [vmem:[%s2675_s10] sm:$0x3] }
 0x9b5   : > { %1621 = vmatprep.mubr.bf16.mxu0 %v2217_v25  ;;  %1590 = vmatpush1.bf16.msra.mxu0 %v2144_v11  ;;  %v1502_v58 = vrot.slane %v1438_v57, %v520_v43 }
 0x9b6   : > { %1591 = vmatprep.subr.bf16.mxu0 %v2149_v13 }
 0xa87   : > { %v1349_v3 = vpop.f32.mrb[24].mxu0 }
 0xa88   : > { %v1355_v60 = vpack.c.bf16 %v1349_v3, %v1349_v3  ;;  %v2080_v61 = vpop.f32.mrb[25].mxu0  ;;  %v1506_v3 = vrot.slane %v1438_v57, %v524_v46 }
 0xa89   : > { %v1352_v62 = vpop.f32.mrb[26].mxu0 }
 0xa8a   : > { %v2081_v1 = vpop.f32.mrb[27].mxu0  ;;  %2087 = vmatmul.mubr.msk.bf16.vlgmr.msra.gmra.mrb[24].mxu1 %vm746_vm2, %v1355_v60 }
 0xa8b   : > { %1969 = vmatpush3.bf16.msra.mxu1 %v2169_v30 }
 0xa8c   : > { %1970 = vmatprep.subr.bf16.mxu1 %v2170_v31 }
 0xa8f   : > { %1971 = vmatpush3.bf16.msra.mxu1 %v2171_v32 }
 0xa90   : > { %1972 = vmatprep.subr.bf16.mxu1 %v2172_v45 }
 0xa93   : > { %1973 = vmatpush3.bf16.msra.mxu1 %v2173_v47 }
 0xa94   : > { %1974 = vmatprep.subr.bf16.mxu1 %v2174_v48 }
 0xa97   : > { %1975 = vmatpush3.bf16.msra.mxu1 %v2175_v49 }
 0xa98   : > { %1976 = vmatprep.subr.bf16.mxu1 %v2176_v59 }
 0xb5d   : > { %v1405_v5 = vpop.f32.mrb[24].mxu1 }
 0xb5e   : > { %v1411_v6 = vadd.f32 %v1405_v5, %v1244_v50  ;;  %v2088_v7 = vpop.f32.mrb[25].mxu1  ;;  %v2177_v50 = vld [vmem:[%s2676_s11 + $0x20] sm:$0xff]  }
 0xb5f   : > { %v1408_v25 = vpop.f32.mrb[26].mxu1  ;;  %1977 = vmatpush3.bf16.msra.mxu1 %v2177_v50 }
 0xb60   : > { %v1418_v8 = vadd.f32 %v1893_v2, %v1411_v6  ;;  %v2089_v9 = vpop.f32.mrb[27].mxu1  ;;  %1978 = vmatprep.subr.bf16.mxu1 %v2178_v51 }
 0xb62   : > { %v2540_v10 = vadd.f32 %v1418_v8, %v2308_v0  ;;  %v2147_v0 = vld [vmem:[%s2674_s9 + $0x10] ss:$8 sps:$4 sm:$0xff]  }
 0xb63   : > { %1592 = vmatpush1.bf16.msra.mxu0 %v2147_v0  ;;  %1979 = vmatpush3.bf16.msra.mxu1 %v2179_v52 }
 0xb64   : > { %1472 = vadd.xlane.f32.xlu1 %v2540_v10  ;;  %1593 = vmatprep.subr.bf16.mxu0 %v2152_v14 }
 0xb65   : > { %1980 = vmatprep.subr.bf16.mxu1 %v2180_v53 }
 0xb67   : > { %1594 = vmatpush1.bf16.msra.mxu0 %v2150_v15  ;;  %1981 = vmatpush3.bf16.msra.mxu1 %v2181_v54 }
 0xb68   : > { %1595 = vmatprep.subr.bf16.mxu0 %v2155_v20  ;;  %1982 = vmatprep.subr.bf16.mxu1 %v2182_v55 }
 0xb6b   : > { %1596 = vmatpush1.bf16.msra.mxu0 %v2153_v4  ;;  %1983 = vmatpush3.bf16.msra.mxu1 %v2183_v56 }
 0xb6c   : > { %1597 = vmatprep.subr.bf16.mxu0 %v2158_v21 }
 0xb6f   : > { %1598 = vmatpush1.bf16.msra.mxu0 %v2156_v22 }
 0xb70   : > { %1599 = vmatprep.subr.bf16.mxu0 %v2161_v23 }
 0xb73   : > { %1600 = vmatpush1.bf16.msra.mxu0 %v2159_v24 }
 0xb74   : > { %1601 = vmatprep.subr.bf16.mxu0 %v2164_v26 }
 0xb77   : > { %1602 = vmatpush1.bf16.msra.mxu0 %v2162_v27 }
 0xb78   : > { %1603 = vmatprep.subr.bf16.mxu0 %v2167_v63 }
 0xb7b   : > { %1604 = vmatpush1.bf16.msra.mxu0 %v2165_v28 }
 0xbf1   : > { %v1473_v16 = vpop.xlane.xlu1 %1472 }
 0xbf2   : > { %v1474_v17 = vmul.f32 0.0078125, %v1473_v16 }
 0xbf4   : > { %v1475_v18 = vsub.f32 %v2540_v10, %v1474_v17 }
 0xbf6   : > { %v1476_v19 = vmul.f32 %v1475_v18, %v1475_v18 }
 0xbf8   : > { %1477 = vadd.xlane.f32.xlu1 %v1476_v19 }
 0xc85   : > { %v1478_v33 = vpop.xlane.xlu1 %1477 }
 0xc86   : > { %v1479_v34 = vmul.f32 0.0078125, %v1478_v33 }
 0xc88   : > { %v1480_v35 = vadd.f32 1e-05, %v1479_v34 }
 0xc8a   : > { %2202 = vrsqrt.f32 %v1480_v35 }
 0xc94   : > { %v2203_v36 = vpop.eup %2202 }
 0xc95   : > { %v1482_v38 = vmul.f32 %v2203_v36, %v1475_v18  ;;  %v1928_v18 = vld [vmem:[%s2677_s12] ss:$0 sm:$0xff] }
 0xc97   : > { %v1489_v40 = vmul.f32 %v1894_v37, %v1482_v38 }
 0xc99   : > { %v1496_v41 = vadd.f32 %v1895_v39, %v1489_v40 }
 0xc9b   : > { %v1497_v44 = vpack.c.bf16 %v1496_v41, %v1496_v41 }
 0xc9d   : > { %1622 = vmatmul.mubr.bf16.vlgmr.msra.gmra.mrb[28].mxu0 %v1497_v44 }
 0xd70   : > { %v1623_v60 = vpop.f32.mrb[28].mxu0 }
 0xd71   : > { %v1624_v61 = vadd.f32 %v1623_v60, %v1502_v58  ;;  %v1625_v62 = vpop.f32.mrb[29].mxu0 }
 0xd72   : > { %v1626_v1 = vadd.f32 %v1625_v62, %v1506_v3  ;;  %v1627_v2 = vpop.f32.mrb[30].mxu0 }
 0xd73   : > { %v1632_v5 = vmul.f32 0.70710677, %v1624_v61  ;;  %v1628_v6 = vpop.f32.mrb[31].mxu0  ;;  %v1630_v9 = vmul.f32 0.5, %v1624_v61 }
 0xd74   : > { %v1633_v7 = vmul.f32 0.70710677, %v1626_v1  ;;  %v1631_v12 = vmul.f32 0.5, %v1626_v1 }
 0xd75   : > { %2204 = verf.f32 %v1632_v5 }
 0xd76   : > { %2206 = verf.f32 %v1633_v7 }
 0xd7f   : > { %v2205_v25 = vpop.eup %2204 }
 0xd80   : > { %v2207_v8 = vpop.eup %2206  ;;  %v1636_v11 = vadd.f32 1.0, %v2205_v25 }
 0xd81   : > { %v1637_v43 = vadd.f32 1.0, %v2207_v8 }
 0xd82   : > { %v1638_v13 = vmul.f32 %v1636_v11, %v1630_v9 }
 0xd83   : > { %v1639_v42 = vmul.f32 %v1637_v43, %v1631_v12 }
 0xd84   : > { %v1640_v0 = vpack.c.bf16 %v1638_v13, %v1638_v13 }
 0xd85   : > { %v1641_v46 = vpack.c.bf16 %v1639_v42, %v1639_v42 }
 0xd87   : > { %1770 = vmatprep.mubr.bf16.mxu1 %v1641_v46 }
 0xd88   : > { %1771 = vmatmul.mubr.bf16.vlgmr.msra.gmra.mrb[28].mxu1 %v1640_v0 }
 0xe5b   : > { %v1984_v14 = vpop.f32.mrb[28].mxu1 }
 0xe5c   : > { %v1985_v15 = vpop.f32.mrb[29].mxu1 }
 0xe5d   : > { %v1986_v16 = vadd.f32 %v1985_v15, %v1984_v14  ;;  %v1987_v17 = vpop.f32.mrb[30].mxu1 }
 0xe5e   : > { %v1988_v19 = vpop.f32.mrb[31].mxu1 }
 0xe5f   : > { %v1778_v20 = vadd.f32 %v1986_v16, %v2540_v10 }
 0xe61   : > { %v1785_v4 = vadd.f32 %v1928_v18, %v1778_v20 }
 0xe63   : > { %1786 = vst [vmem:[%s435_s23] sm:$0xff] %v1785_v4 }
 0xe64 PF: > { %s23_s25 = sadd.s32 1, %s2214_s25  }
 0xe65   : > { %p20_p4 = scmp.ge.s32.totalorder %s23_s25, 4  }
 0xe67   :  { %22 = sbr.rel (!%p20_p4) target bundleno = 1 (0x1), region = 102 }

</bundles_post_ra>
